<compile_context>
chip_gen: v7x
topology: tpu7x:2x2x1
jax: 0.10.0
libtpu: 0.0.40
codegen_flags: <defaults>
</compile_context>

<pallas_src>
import jax
import jax.numpy as jnp
from jax import lax
from jax.experimental import pallas as pl
from jax.experimental.pallas import tpu as pltpu

EPS = 1e-5
LANE = 128


def _round_up(v, m):
    return (v + m - 1) // m * m


# ------------------------------ fused kernel --------------------------------
def _bottleneck_kernel(x_ref, w1_ref, b1_ref, w2_ref, b2_ref, w3_ref, b3_ref,
                       o_ref, o1p_ref):
    """Fused conv1+bn1+relu -> conv2(3x3)+bn2+relu -> conv3+bn3+residual+relu.

    Per grid step (one image):
      x_ref   (1, H, W, Cp)    input, channels zero-padded to Cp, compute dtype
      w1_ref  (Cp, Pp)         conv1 1x1 weights, bn1 scale folded in
      b1_ref  (1, Pp)          bn1 bias (f32)
      w2_ref  (9, Pp, Pp)      conv2 3x3 taps (index kh*3+kw), bn2 scale folded
      b2_ref  (1, Pp)          bn2 bias (f32)
      w3_ref  (Pp, Cp)         conv3 1x1 weights, bn3 scale folded in
      b3_ref  (1, Cp)          bn3 bias (f32)
      o_ref   (1, H, W, Cp)    output (f32)
      o1p_ref (H+3, W+2, Pp)   f32 VMEM scratch: zero-padded conv1 output
                               (1-row top / 2-row bottom halo for the
                               flattened-shift conv; only 1 row is "real" pad,
                               the extra row keeps every tap slice in bounds)
    """
    _, H, W, Cp = x_ref.shape
    Hp, Wp, Pp = o1p_ref.shape           # Hp = H + 3, Wp = W + 2
    M = H * W
    Mr = H * Wp                          # rows in the shifted-conv accumulator
    cdt = w1_ref.dtype                   # MXU operand dtype (f32 / bf16)

    x2d = x_ref[...].reshape(M, Cp)      # compute dtype; residual cast later

    # ---- conv1 (1x1) + bn1 + relu ------------------------------------------
    o1 = jnp.dot(x2d, w1_ref[...], preferred_element_type=jnp.float32)
    o1 = jnp.maximum(o1 + b1_ref[...], 0.0)

    # Zero the halo (every step: safe under megacore grid sharding), then
    # write the interior.
    o1p_ref[...] = jnp.zeros_like(o1p_ref)
    o1p_ref[1:H + 1, 1:W + 1, :] = o1.reshape(H, W, Pp)

    # ---- conv2 (3x3, stride=1, pad=1): 9 shifted, contiguous MXU matmuls ---
    # Collapsing (row, col) preserves memory order, so each tap is a
    # contiguous (Mr, Pp) slice of the flattened padded buffer: the input for
    # output position (h, w) under tap (kh, kw) lives at flat index
    # (h + kh) * Wp + (w + kw) = (Wp + 1) + (h * Wp + w) + (kh-1)*Wp + (kw-1).
    flat = o1p_ref[...].reshape(Hp * Wp, Pp)
    first = Wp + 1                       # flat index of interior (0, 0)
    acc = None
    for kh in range(3):
        for kw in range(3):
            start = first + (kh - 1) * Wp + (kw - 1)     # static
            patch = flat[start:start + Mr, :]
            d = jnp.dot(patch.astype(cdt), w2_ref[kh * 3 + kw],
                        preferred_element_type=jnp.float32)
            acc = d if acc is None else acc + d
    o2 = jnp.maximum(acc + b2_ref[...], 0.0)             # (Mr, Pp)
    # Interior output (h, w) lives at accumulator row h*Wp + w; the remaining
    # rows are halo garbage -> drop them with a single extraction.
    o2 = o2.reshape(H, Wp, Pp)[:, :W, :].reshape(M, Pp)

    # ---- conv3 (1x1) + bn3 + identity residual + relu ----------------------
    o3 = jnp.dot(o2.astype(cdt), w3_ref[...],
                 preferred_element_type=jnp.float32)
    out = jnp.maximum(o3 + b3_ref[...] + x2d.astype(jnp.float32), 0.0)
    o_ref[...] = out.reshape(1, H, W, Cp).astype(o_ref.dtype)


# ------------------------------- glue (JAX) ----------------------------------
def _fold_bn(gamma, beta, mean, var, eps=EPS):
    scale = gamma / jnp.sqrt(var + eps)
    bias = beta - mean * scale
    return scale, bias


def bottleneck_forward_nhwc(x_nhwc, params, stride=1,
                            compute_dtype=jnp.bfloat16):
    """Fused Pallas Bottleneck forward on NHWC activations (preferred entry)."""
    if stride != 1:
        # TODO(synk): stride>1 needs the `downsample` branch for the residual;
        # that configuration is not constructed in this module instance.
        raise NotImplementedError(
            "fused Bottleneck kernel supports stride=1 (downsample=None) only")

    Nb, H, W, Cin = x_nhwc.shape
    w1 = params["conv1_w"]            # (planes, Cin, 1, 1)
    w2 = params["conv2_w"]            # (planes, planes, 3, 3)
    w3 = params["conv3_w"]            # (planes*4, planes, 1, 1)
    planes = w1.shape[0]
    out_ch = w3.shape[0]
    if Cin != out_ch:
        raise ValueError("identity residual requires inplanes == planes*4 "
                         "when downsample is None")

    s1, b1 = _fold_bn(*params["bn1"])
    s2, b2 = _fold_bn(*params["bn2"])
    s3, b3 = _fold_bn(*params["bn3"])

    # Lane-dense channel padding (no-op for real ResNet widths >= 128).
    Cp = _round_up(Cin, LANE)
    Pp = _round_up(planes, LANE)

    f32 = jnp.float32
    # Fold BN scale into the weight columns; zero-pad to lane-dense shapes.
    W1 = jnp.zeros((Cp, Pp), f32).at[:Cin, :planes].set(
        w1[:, :, 0, 0].T * s1[None, :])
    w2_taps = (jnp.transpose(w2, (2, 3, 1, 0)).reshape(9, planes, planes)
               * s2[None, None, :])
    W2 = jnp.zeros((9, Pp, Pp), f32).at[:, :planes, :planes].set(w2_taps)
    W3 = jnp.zeros((Pp, Cp), f32).at[:planes, :out_ch].set(
        w3[:, :, 0, 0].T * s3[None, :])
    B1 = jnp.zeros((1, Pp), f32).at[0, :planes].set(b1)
    B2 = jnp.zeros((1, Pp), f32).at[0, :planes].set(b2)
    B3 = jnp.zeros((1, Cp), f32).at[0, :out_ch].set(b3)

    x_p = x_nhwc
    if Cp != Cin:
        x_p = jnp.pad(x_nhwc, ((0, 0), (0, 0), (0, 0), (0, Cp - Cin)))
    x_p = x_p.astype(compute_dtype)
    W1 = W1.astype(compute_dtype)
    W2 = W2.astype(compute_dtype)
    W3 = W3.astype(compute_dtype)

    M = H * W
    Mr = H * (W + 2)
    itemsize = jnp.dtype(compute_dtype).itemsize
    flops = 2 * Nb * (M * Cp * Pp + 9 * Mr * Pp * Pp + M * Pp * Cp)
    bytes_accessed = (x_p.size * itemsize + Nb * M * Cp * 4
                      + (W1.size + W2.size + W3.size) * itemsize
                      + (B1.size + B2.size + B3.size) * 4)

    # Explicit VMEM budget (keeps double-buffering alive, headroom under
    # v7x's 64 MiB): 2x (x/out blocks) + weights + halo scratch + f32 temps.
    scratch_bytes = (H + 3) * (W + 2) * Pp * 4
    weight_bytes = ((W1.size + W2.size + W3.size) * itemsize
                    + (B1.size + B2.size + B3.size) * 4)
    io_bytes = M * Cp * itemsize + M * Cp * 4
    vmem_est = (2 * io_bytes + 2 * weight_bytes + scratch_bytes
                + 6 * Mr * max(Cp, Pp) * 4)
    vmem_limit = int(min(max(2 * vmem_est, 32 * 1024 * 1024),
                         48 * 1024 * 1024))

    out_p = pl.pallas_call(
        _bottleneck_kernel,
        out_shape=jax.ShapeDtypeStruct((Nb, H, W, Cp), jnp.float32),
        grid=(Nb,),
        in_specs=[
            pl.BlockSpec((1, H, W, Cp), lambda n: (n, 0, 0, 0)),
            pl.BlockSpec((Cp, Pp), lambda n: (0, 0)),
            pl.BlockSpec((1, Pp), lambda n: (0, 0)),
            pl.BlockSpec((9, Pp, Pp), lambda n: (0, 0, 0)),
            pl.BlockSpec((1, Pp), lambda n: (0, 0)),
            pl.BlockSpec((Pp, Cp), lambda n: (0, 0)),
            pl.BlockSpec((1, Cp), lambda n: (0, 0)),
        ],
        out_specs=pl.BlockSpec((1, H, W, Cp), lambda n: (n, 0, 0, 0)),
        scratch_shapes=[pltpu.VMEM((H + 3, W + 2, Pp), jnp.float32)],
        compiler_params=pltpu.CompilerParams(
            dimension_semantics=("parallel",),
            vmem_limit_bytes=vmem_limit),
        cost_estimate=pl.CostEstimate(flops=flops, transcendentals=0,
                                      bytes_accessed=bytes_accessed),
    )(x_p, W1, B1, W2, B2, W3, B3)

    if Cp != out_ch:
        out_p = out_p[..., :out_ch]
    return out_p


def bottleneck_forward(x_nchw, params, stride=1, compute_dtype=jnp.bfloat16):
    """NCHW adapter matching the PyTorch module boundary (transposes at edges)."""
    x = jnp.transpose(x_nchw, (0, 2, 3, 1))
    y = bottleneck_forward_nhwc(x, params, stride=stride,
                                compute_dtype=compute_dtype)
    return jnp.transpose(y, (0, 3, 1, 2))


# ---------------------------- pure-JAX reference -----------------------------
def bottleneck_reference(x_nchw, params, stride=1):
    x = jnp.transpose(x_nchw, (0, 2, 3, 1))

    def bn(y, p):
        g, b, m, v = p
        return (y - m) / jnp.sqrt(v + EPS) * g + b

    w1, w2, w3 = params["conv1_w"], params["conv2_w"], params["conv3_w"]
    y = jnp.einsum("nhwc,oc->nhwo", x, w1[:, :, 0, 0])
    y = jax.nn.relu(bn(y, params["bn1"]))
    y = lax.conv_general_dilated(
        y, jnp.transpose(w2, (2, 3, 1, 0)),
        window_strides=(stride, stride), padding=((1, 1), (1, 1)),
        dimension_numbers=("NHWC", "HWIO", "NHWC"))
    y = jax.nn.relu(bn(y, params["bn2"]))
    y = jnp.einsum("nhwc,oc->nhwo", y, w3[:, :, 0, 0])
    y = bn(y, params["bn3"]) + x
    y = jax.nn.relu(y)
    return jnp.transpose(y, (0, 3, 1, 2))


# ----------------------------------- main ------------------------------------
if __name__ == "__main__":
    key = jax.random.PRNGKey(0)
    planes, expansion = 8, 4
    inplanes = planes * expansion        # identity residual needs Cin == planes*4
    Nb, H, W = 2, 8, 8
    stride = 1

    ks = jax.random.split(key, 16)
    params = {
        "conv1_w": 0.1 * jax.random.normal(ks[0], (planes, inplanes, 1, 1), jnp.float32),
        "conv2_w": 0.1 * jax.random.normal(ks[1], (planes, planes, 3, 3), jnp.float32),
        "conv3_w": 0.1 * jax.random.normal(ks[2], (planes * expansion, planes, 1, 1), jnp.float32),
        "bn1": (jax.random.uniform(ks[3], (planes,), minval=0.5, maxval=1.5),
                0.1 * jax.random.normal(ks[4], (planes,)),
                0.1 * jax.random.normal(ks[5], (planes,)),
                jax.random.uniform(ks[6], (planes,), minval=0.5, maxval=1.5)),
        "bn2": (jax.random.uniform(ks[7], (planes,), minval=0.5, maxval=1.5),
                0.1 * jax.random.normal(ks[8], (planes,)),
                0.1 * jax.random.normal(ks[9], (planes,)),
                jax.random.uniform(ks[10], (planes,), minval=0.5, maxval=1.5)),
        "bn3": (jax.random.uniform(ks[11], (planes * expansion,), minval=0.5, maxval=1.5),
                0.1 * jax.random.normal(ks[12], (planes * expansion,)),
                0.1 * jax.random.normal(ks[13], (planes * expansion,)),
                jax.random.uniform(ks[14], (planes * expansion,), minval=0.5, maxval=1.5)),
    }

    x = jax.random.normal(ks[15], (Nb, inplanes, H, W), jnp.float32)

    ref = jax.block_until_ready(bottleneck_reference(x, params, stride=stride))

    # Exact-precision path (f32 MXU operands) -- tight tolerance.
    out_f32 = jax.block_until_ready(
        bottleneck_forward(x, params, stride=stride, compute_dtype=jnp.float32))
    assert out_f32.shape == (Nb, planes * expansion, H, W), out_f32.shape
    if not jnp.allclose(out_f32, ref, rtol=1e-3, atol=1e-3):
        raise AssertionError("Pallas Bottleneck (f32) mismatch vs reference")

    # Fast path: bf16 MXU operands (v6e/v7x), f32 accumulation + f32 epilogue.
    out_bf16 = jax.block_until_ready(
        bottleneck_forward(x, params, stride=stride, compute_dtype=jnp.bfloat16))
    if not jnp.allclose(out_bf16, ref, rtol=3e-2, atol=3e-2):
        raise AssertionError("Pallas Bottleneck (bf16) mismatch vs reference")

    print("KERNEL_OK")
</pallas_src>

<mosaic_0001>
module attributes {stable_mosaic.version = 11 : i64} {
  func.func @_bottleneck_kernel(%arg0: i32, %arg1: memref<1x8x8x128xf32, #tpu.memory_space<vmem>>, %arg2: memref<128x128xf32, #tpu.memory_space<vmem>>, %arg3: memref<1x128xf32, #tpu.memory_space<vmem>>, %arg4: memref<9x128x128xf32, #tpu.memory_space<vmem>>, %arg5: memref<1x128xf32, #tpu.memory_space<vmem>>, %arg6: memref<128x128xf32, #tpu.memory_space<vmem>>, %arg7: memref<1x128xf32, #tpu.memory_space<vmem>>, %arg8: memref<1x8x8x128xf32, #tpu.memory_space<vmem>>, %arg9: memref<11x10x128xf32, #tpu.memory_space<vmem>>) attributes {dimension_semantics = [#tpu.dimension_semantics<parallel>], iteration_bounds = array<i64: 2>, scalar_prefetch = 0 : i64, scratch_operands = 1 : i64, tpu.core_type = #tpu.core_type<tc>, window_params = [{transform_indices = @transform_0, window_bounds = array<i64: 1, 8, 8, 128>}, {pipeline_mode = #tpu.pipeline_mode<synchronous>, transform_indices = @transform_1, window_bounds = array<i64: 128, 128>}, {pipeline_mode = #tpu.pipeline_mode<synchronous>, transform_indices = @transform_2, window_bounds = array<i64: 1, 128>}, {pipeline_mode = #tpu.pipeline_mode<synchronous>, transform_indices = @transform_3, window_bounds = array<i64: 9, 128, 128>}, {pipeline_mode = #tpu.pipeline_mode<synchronous>, transform_indices = @transform_4, window_bounds = array<i64: 1, 128>}, {pipeline_mode = #tpu.pipeline_mode<synchronous>, transform_indices = @transform_5, window_bounds = array<i64: 128, 128>}, {pipeline_mode = #tpu.pipeline_mode<synchronous>, transform_indices = @transform_6, window_bounds = array<i64: 1, 128>}, {transform_indices = @transform_7, window_bounds = array<i64: 1, 8, 8, 128>}]} {
    %c0 = arith.constant 0 : index
    %c0_0 = arith.constant 0 : index
    %c0_1 = arith.constant 0 : index
    %c0_2 = arith.constant 0 : index
    %0 = vector.load %arg1[%c0, %c0_0, %c0_1, %c0_2] : memref<1x8x8x128xf32, #tpu.memory_space<vmem>>, vector<1x8x8x128xf32>
    %1 = vector.shape_cast %0 : vector<1x8x8x128xf32> to vector<64x128xf32>
    %c0_3 = arith.constant 0 : index
    %c0_4 = arith.constant 0 : index
    %2 = vector.load %arg2[%c0_3, %c0_4] : memref<128x128xf32, #tpu.memory_space<vmem>>, vector<128x128xf32>
    %cst = arith.constant dense<0.000000e+00> : vector<64x128xf32>
    %3 = tpu.matmul %1, %2, %cst {dimension_numbers = #tpu.dot_dimension_numbers<[1], [0], [0], [1], [0, 0, 1, 1], [], []>} : vector<64x128xf32>, vector<128x128xf32>, vector<64x128xf32> -> vector<64x128xf32>
    %c0_5 = arith.constant 0 : index
    %c0_6 = arith.constant 0 : index
    %4 = vector.load %arg3[%c0_5, %c0_6] : memref<1x128xf32, #tpu.memory_space<vmem>>, vector<1x128xf32>
    %5 = vector.broadcast %4 : vector<1x128xf32> to vector<64x128xf32>
    %6 = arith.addf %3, %5 : vector<64x128xf32>
    %cst_7 = arith.constant 0.000000e+00 : f32
    %7 = vector.broadcast %cst_7 : f32 to vector<64x128xf32>
    %8 = arith.maximumf %6, %7 : vector<64x128xf32>
    %cst_8 = arith.constant 0.000000e+00 : f32
    %9 = vector.broadcast %cst_8 : f32 to vector<11x10x128xf32>
    %c0_9 = arith.constant 0 : index
    %c0_10 = arith.constant 0 : index
    %c0_11 = arith.constant 0 : index
    %10 = vector.load %arg9[%c0_9, %c0_10, %c0_11] : memref<11x10x128xf32, #tpu.memory_space<vmem>>, vector<11x10x128xf32>
    tpu.vector_store %arg9[%c0_9, %c0_10, %c0_11], %9 {strides = array<i32>} : memref<11x10x128xf32, #tpu.memory_space<vmem>>, vector<11x10x128xf32>,
    %11 = vector.shape_cast %8 : vector<64x128xf32> to vector<8x8x128xf32>
    %c1 = arith.constant 1 : index
    %c1_12 = arith.constant 1 : index
    %c0_13 = arith.constant 0 : index
    %12 = vector.load %arg9[%c1, %c1_12, %c0_13] : memref<11x10x128xf32, #tpu.memory_space<vmem>>, vector<8x8x128xf32>
    tpu.vector_store %arg9[%c1, %c1_12, %c0_13], %11 {strides = array<i32>} : memref<11x10x128xf32, #tpu.memory_space<vmem>>, vector<8x8x128xf32>,
    %c0_14 = arith.constant 0 : index
    %c0_15 = arith.constant 0 : index
    %c0_16 = arith.constant 0 : index
    %13 = vector.load %arg9[%c0_14, %c0_15, %c0_16] : memref<11x10x128xf32, #tpu.memory_space<vmem>>, vector<11x10x128xf32>
    %14 = vector.shape_cast %13 : vector<11x10x128xf32> to vector<110x128xf32>
    %15 = vector.extract_strided_slice %14 {offsets = [0, 0], sizes = [80, 128], strides = [1, 1]} : vector<110x128xf32> to vector<80x128xf32>
    %c0_17 = arith.constant 0 : index
    %c0_18 = arith.constant 0 : index
    %c0_19 = arith.constant 0 : index
    %16 = vector.load %arg4[%c0_17, %c0_18, %c0_19] : memref<9x128x128xf32, #tpu.memory_space<vmem>>, vector<1x128x128xf32>
    %17 = vector.shape_cast %16 : vector<1x128x128xf32> to vector<128x128xf32>
    %cst_20 = arith.constant dense<0.000000e+00> : vector<80x128xf32>
    %18 = tpu.matmul %15, %17, %cst_20 {dimension_numbers = #tpu.dot_dimension_numbers<[1], [0], [0], [1], [0, 0, 1, 1], [], []>} : vector<80x128xf32>, vector<128x128xf32>, vector<80x128xf32> -> vector<80x128xf32>
    %19 = vector.extract_strided_slice %14 {offsets = [1, 0], sizes = [80, 128], strides = [1, 1]} : vector<110x128xf32> to vector<80x128xf32>
    %c1_21 = arith.constant 1 : index
    %c0_22 = arith.constant 0 : index
    %c0_23 = arith.constant 0 : index
    %20 = vector.load %arg4[%c1_21, %c0_22, %c0_23] : memref<9x128x128xf32, #tpu.memory_space<vmem>>, vector<1x128x128xf32>
    %21 = vector.shape_cast %20 : vector<1x128x128xf32> to vector<128x128xf32>
    %cst_24 = arith.constant dense<0.000000e+00> : vector<80x128xf32>
    %22 = tpu.matmul %19, %21, %cst_24 {dimension_numbers = #tpu.dot_dimension_numbers<[1], [0], [0], [1], [0, 0, 1, 1], [], []>} : vector<80x128xf32>, vector<128x128xf32>, vector<80x128xf32> -> vector<80x128xf32>
    %23 = arith.addf %18, %22 : vector<80x128xf32>
    %24 = vector.extract_strided_slice %14 {offsets = [2, 0], sizes = [80, 128], strides = [1, 1]} : vector<110x128xf32> to vector<80x128xf32>
    %c2 = arith.constant 2 : index
    %c0_25 = arith.constant 0 : index
    %c0_26 = arith.constant 0 : index
    %25 = vector.load %arg4[%c2, %c0_25, %c0_26] : memref<9x128x128xf32, #tpu.memory_space<vmem>>, vector<1x128x128xf32>
    %26 = vector.shape_cast %25 : vector<1x128x128xf32> to vector<128x128xf32>
    %cst_27 = arith.constant dense<0.000000e+00> : vector<80x128xf32>
    %27 = tpu.matmul %24, %26, %cst_27 {dimension_numbers = #tpu.dot_dimension_numbers<[1], [0], [0], [1], [0, 0, 1, 1], [], []>} : vector<80x128xf32>, vector<128x128xf32>, vector<80x128xf32> -> vector<80x128xf32>
    %28 = arith.addf %23, %27 : vector<80x128xf32>
    %29 = vector.extract_strided_slice %14 {offsets = [10, 0], sizes = [80, 128], strides = [1, 1]} : vector<110x128xf32> to vector<80x128xf32>
    %c3 = arith.constant 3 : index
    %c0_28 = arith.constant 0 : index
    %c0_29 = arith.constant 0 : index
    %30 = vector.load %arg4[%c3, %c0_28, %c0_29] : memref<9x128x128xf32, #tpu.memory_space<vmem>>, vector<1x128x128xf32>
    %31 = vector.shape_cast %30 : vector<1x128x128xf32> to vector<128x128xf32>
    %cst_30 = arith.constant dense<0.000000e+00> : vector<80x128xf32>
    %32 = tpu.matmul %29, %31, %cst_30 {dimension_numbers = #tpu.dot_dimension_numbers<[1], [0], [0], [1], [0, 0, 1, 1], [], []>} : vector<80x128xf32>, vector<128x128xf32>, vector<80x128xf32> -> vector<80x128xf32>
    %33 = arith.addf %28, %32 : vector<80x128xf32>
    %34 = vector.extract_strided_slice %14 {offsets = [11, 0], sizes = [80, 128], strides = [1, 1]} : vector<110x128xf32> to vector<80x128xf32>
    %c4 = arith.constant 4 : index
    %c0_31 = arith.constant 0 : index
    %c0_32 = arith.constant 0 : index
    %35 = vector.load %arg4[%c4, %c0_31, %c0_32] : memref<9x128x128xf32, #tpu.memory_space<vmem>>, vector<1x128x128xf32>
    %36 = vector.shape_cast %35 : vector<1x128x128xf32> to vector<128x128xf32>
    %cst_33 = arith.constant dense<0.000000e+00> : vector<80x128xf32>
    %37 = tpu.matmul %34, %36, %cst_33 {dimension_numbers = #tpu.dot_dimension_numbers<[1], [0], [0], [1], [0, 0, 1, 1], [], []>} : vector<80x128xf32>, vector<128x128xf32>, vector<80x128xf32> -> vector<80x128xf32>
    %38 = arith.addf %33, %37 : vector<80x128xf32>
    %39 = vector.extract_strided_slice %14 {offsets = [12, 0], sizes = [80, 128], strides = [1, 1]} : vector<110x128xf32> to vector<80x128xf32>
    %c5 = arith.constant 5 : index
    %c0_34 = arith.constant 0 : index
    %c0_35 = arith.constant 0 : index
    %40 = vector.load %arg4[%c5, %c0_34, %c0_35] : memref<9x128x128xf32, #tpu.memory_space<vmem>>, vector<1x128x128xf32>
    %41 = vector.shape_cast %40 : vector<1x128x128xf32> to vector<128x128xf32>
    %cst_36 = arith.constant dense<0.000000e+00> : vector<80x128xf32>
    %42 = tpu.matmul %39, %41, %cst_36 {dimension_numbers = #tpu.dot_dimension_numbers<[1], [0], [0], [1], [0, 0, 1, 1], [], []>} : vector<80x128xf32>, vector<128x128xf32>, vector<80x128xf32> -> vector<80x128xf32>
    %43 = arith.addf %38, %42 : vector<80x128xf32>
    %44 = vector.extract_strided_slice %14 {offsets = [20, 0], sizes = [80, 128], strides = [1, 1]} : vector<110x128xf32> to vector<80x128xf32>
    %c6 = arith.constant 6 : index
    %c0_37 = arith.constant 0 : index
    %c0_38 = arith.constant 0 : index
    %45 = vector.load %arg4[%c6, %c0_37, %c0_38] : memref<9x128x128xf32, #tpu.memory_space<vmem>>, vector<1x128x128xf32>
    %46 = vector.shape_cast %45 : vector<1x128x128xf32> to vector<128x128xf32>
    %cst_39 = arith.constant dense<0.000000e+00> : vector<80x128xf32>
    %47 = tpu.matmul %44, %46, %cst_39 {dimension_numbers = #tpu.dot_dimension_numbers<[1], [0], [0], [1], [0, 0, 1, 1], [], []>} : vector<80x128xf32>, vector<128x128xf32>, vector<80x128xf32> -> vector<80x128xf32>
    %48 = arith.addf %43, %47 : vector<80x128xf32>
    %49 = vector.extract_strided_slice %14 {offsets = [21, 0], sizes = [80, 128], strides = [1, 1]} : vector<110x128xf32> to vector<80x128xf32>
    %c7 = arith.constant 7 : index
    %c0_40 = arith.constant 0 : index
    %c0_41 = arith.constant 0 : index
    %50 = vector.load %arg4[%c7, %c0_40, %c0_41] : memref<9x128x128xf32, #tpu.memory_space<vmem>>, vector<1x128x128xf32>
    %51 = vector.shape_cast %50 : vector<1x128x128xf32> to vector<128x128xf32>
    %cst_42 = arith.constant dense<0.000000e+00> : vector<80x128xf32>
    %52 = tpu.matmul %49, %51, %cst_42 {dimension_numbers = #tpu.dot_dimension_numbers<[1], [0], [0], [1], [0, 0, 1, 1], [], []>} : vector<80x128xf32>, vector<128x128xf32>, vector<80x128xf32> -> vector<80x128xf32>
    %53 = arith.addf %48, %52 : vector<80x128xf32>
    %54 = vector.extract_strided_slice %14 {offsets = [22, 0], sizes = [80, 128], strides = [1, 1]} : vector<110x128xf32> to vector<80x128xf32>
    %c8 = arith.constant 8 : index
    %c0_43 = arith.constant 0 : index
    %c0_44 = arith.constant 0 : index
    %55 = vector.load %arg4[%c8, %c0_43, %c0_44] : memref<9x128x128xf32, #tpu.memory_space<vmem>>, vector<1x128x128xf32>
    %56 = vector.shape_cast %55 : vector<1x128x128xf32> to vector<128x128xf32>
    %cst_45 = arith.constant dense<0.000000e+00> : vector<80x128xf32>
    %57 = tpu.matmul %54, %56, %cst_45 {dimension_numbers = #tpu.dot_dimension_numbers<[1], [0], [0], [1], [0, 0, 1, 1], [], []>} : vector<80x128xf32>, vector<128x128xf32>, vector<80x128xf32> -> vector<80x128xf32>
    %58 = arith.addf %53, %57 : vector<80x128xf32>
    %c0_46 = arith.constant 0 : index
    %c0_47 = arith.constant 0 : index
    %59 = vector.load %arg5[%c0_46, %c0_47] : memref<1x128xf32, #tpu.memory_space<vmem>>, vector<1x128xf32>
    %60 = vector.broadcast %59 : vector<1x128xf32> to vector<80x128xf32>
    %61 = arith.addf %58, %60 : vector<80x128xf32>
    %cst_48 = arith.constant 0.000000e+00 : f32
    %62 = vector.broadcast %cst_48 : f32 to vector<80x128xf32>
    %63 = arith.maximumf %61, %62 : vector<80x128xf32>
    %64 = vector.shape_cast %63 : vector<80x128xf32> to vector<8x10x128xf32>
    %65 = vector.extract_strided_slice %64 {offsets = [0, 0, 0], sizes = [8, 8, 128], strides = [1, 1, 1]} : vector<8x10x128xf32> to vector<8x8x128xf32>
    %66 = vector.shape_cast %65 : vector<8x8x128xf32> to vector<64x128xf32>
    %c0_49 = arith.constant 0 : index
    %c0_50 = arith.constant 0 : index
    %67 = vector.load %arg6[%c0_49, %c0_50] : memref<128x128xf32, #tpu.memory_space<vmem>>, vector<128x128xf32>
    %cst_51 = arith.constant dense<0.000000e+00> : vector<64x128xf32>
    %68 = tpu.matmul %66, %67, %cst_51 {dimension_numbers = #tpu.dot_dimension_numbers<[1], [0], [0], [1], [0, 0, 1, 1], [], []>} : vector<64x128xf32>, vector<128x128xf32>, vector<64x128xf32> -> vector<64x128xf32>
    %c0_52 = arith.constant 0 : index
    %c0_53 = arith.constant 0 : index
    %69 = vector.load %arg7[%c0_52, %c0_53] : memref<1x128xf32, #tpu.memory_space<vmem>>, vector<1x128xf32>
    %70 = vector.broadcast %69 : vector<1x128xf32> to vector<64x128xf32>
    %71 = arith.addf %68, %70 : vector<64x128xf32>
    %72 = arith.addf %71, %1 : vector<64x128xf32>
    %cst_54 = arith.constant 0.000000e+00 : f32
    %73 = vector.broadcast %cst_54 : f32 to vector<64x128xf32>
    %74 = arith.maximumf %72, %73 : vector<64x128xf32>
    %75 = vector.shape_cast %74 : vector<64x128xf32> to vector<1x8x8x128xf32>
    %c0_55 = arith.constant 0 : index
    %c0_56 = arith.constant 0 : index
    %c0_57 = arith.constant 0 : index
    %c0_58 = arith.constant 0 : index
    %76 = vector.load %arg8[%c0_55, %c0_56, %c0_57, %c0_58] : memref<1x8x8x128xf32, #tpu.memory_space<vmem>>, vector<1x8x8x128xf32>
    tpu.vector_store %arg8[%c0_55, %c0_56, %c0_57, %c0_58], %75 {strides = array<i32>} : memref<1x8x8x128xf32, #tpu.memory_space<vmem>>, vector<1x8x8x128xf32>,
    return
  }
  func.func @transform_0(%arg0: i32) -> (i32, i32, i32, i32) {
    %c0_i32 = arith.constant 0 : i32
    %c0_i32_0 = arith.constant 0 : i32
    %c0_i32_1 = arith.constant 0 : i32
    %c0_i32_2 = arith.constant 0 : i32
    return %arg0, %c0_i32, %c0_i32_0, %c0_i32_1 : i32, i32, i32, i32
  }
  func.func @transform_1(%arg0: i32) -> (i32, i32) {
    %c0_i32 = arith.constant 0 : i32
    %c0_i32_0 = arith.constant 0 : i32
    %c0_i32_1 = arith.constant 0 : i32
    return %c0_i32, %c0_i32_0 : i32, i32
  }
  func.func @transform_2(%arg0: i32) -> (i32, i32) {
    %c0_i32 = arith.constant 0 : i32
    %c0_i32_0 = arith.constant 0 : i32
    %c0_i32_1 = arith.constant 0 : i32
    return %c0_i32, %c0_i32_0 : i32, i32
  }
  func.func @transform_3(%arg0: i32) -> (i32, i32, i32) {
    %c0_i32 = arith.constant 0 : i32
    %c0_i32_0 = arith.constant 0 : i32
    %c0_i32_1 = arith.constant 0 : i32
    %c0_i32_2 = arith.constant 0 : i32
    return %c0_i32, %c0_i32_0, %c0_i32_1 : i32, i32, i32
  }
  func.func @transform_4(%arg0: i32) -> (i32, i32) {
    %c0_i32 = arith.constant 0 : i32
    %c0_i32_0 = arith.constant 0 : i32
    %c0_i32_1 = arith.constant 0 : i32
    return %c0_i32, %c0_i32_0 : i32, i32
  }
  func.func @transform_5(%arg0: i32) -> (i32, i32) {
    %c0_i32 = arith.constant 0 : i32
    %c0_i32_0 = arith.constant 0 : i32
    %c0_i32_1 = arith.constant 0 : i32
    return %c0_i32, %c0_i32_0 : i32, i32
  }
  func.func @transform_6(%arg0: i32) -> (i32, i32) {
    %c0_i32 = arith.constant 0 : i32
    %c0_i32_0 = arith.constant 0 : i32
    %c0_i32_1 = arith.constant 0 : i32
    return %c0_i32, %c0_i32_0 : i32, i32
  }
  func.func @transform_7(%arg0: i32) -> (i32, i32, i32, i32) {
    %c0_i32 = arith.constant 0 : i32
    %c0_i32_0 = arith.constant 0 : i32
    %c0_i32_1 = arith.constant 0 : i32
    %c0_i32_2 = arith.constant 0 : i32
    return %arg0, %c0_i32, %c0_i32_0, %c0_i32_1 : i32, i32, i32, i32
  }
}

</mosaic_0001>

<bundles_post_ra>
// kernel: tpu_custom_call.1
= control target key start
LH: loop header
LB: loop body
LE: loop exit
PB: predicated region body
PF: predicated region fallthrough
CT: control target
= control target key end

     0   :  { %12 = vsyncpa [#allocation4], 0  ;;  %s5819_s0 = inlined_call_operand.hbm [shape: f32[2,8,8,128], index: 0, kind: input, shape index: {}]   ;;  %s5820_s1 = inlined_call_operand.hbm [shape: f32[128,128], index: 1, kind: input, shape index: {}]   ;;  %s5821_s2 = inlined_call_operand.vmem [shape: f32[1,128], index: 2, kind: input, shape index: {}]   ;;  %s5822_s3 = inlined_call_operand.hbm [shape: f32[9,128,128], index: 3, kind: input, shape index: {}]   ;;  %s5823_s4 = inlined_call_operand.vmem [shape: f32[1,128], index: 4, kind: input, shape index: {}]   ;;  %s5824_s5 = inlined_call_operand.hbm [shape: f32[128,128], index: 5, kind: input, shape index: {}]   ;;  %s5825_s6 = inlined_call_operand.vmem [shape: f32[1,128], index: 6, kind: input, shape index: {}]   ;;  %s5826_s7 = inlined_call_operand.hbm [shape: f32[2,8,8,128], index: 7, kind: output, shape index: {}]  }
   0x1   :  { %14 = vsyncpa [#allocation4 + $0x1], 0 }
   0x2   :  { %15 = vsyncpa [#allocation7], 0 }
   0x3   :  { %16 = vsyncpa [#allocation10], 0 }
   0x4   :  { %17 = vsyncpa [#allocation5], 0 }
   0x5   :  { %19 = vsyncpa [#allocation5 + $0x1], 0  ;;  %s4893_s24 = smov 0   ;;  %s4895_s25 = smov 0  }
   0x6   :  { %s4897_s26 = smov 0   ;;  %s4899_s27 = smov 0  }
   0x7 LB: > { %s4914_s28 = sadd.s32 4294967295, %s4840_s27   ;;  %s3276_s29 = sadd.s32 4294967294, %s4840_s27   ;;  %s4840_s27 = sphi %s4899_s27, %s5933_s27   ;;  %s4836_s26 = sphi %s4897_s26, %s5932_s26   ;;  %s4832_s25 = sphi %s4895_s25, %s5931_s25   ;;  %s4828_s24 = sphi %s4893_s24, %s5930_s24  }
   0x8   : > { %p45_p0 = scmp.ne.s32.totalorder %s4832_s25, %s4828_s24  ;;  %p5827_p1 = scmp.eq.s32.totalorder %s4914_s28, 0 }
   0x9   : > { %p201_p3 = scmp.eq.s32.totalorder %s3276_s29, 1  ;;  %p3277_p5 = scmp.ge.s32.totalorder %s4840_s27, 1 }
   0xa   : > { %p4923_p4 = por %p5827_p1, %p45_p0  ;;  %p208_p7 = scmp.lt.s32.totalorder %s4840_s27, 3 }
   0xb   : > { %p4928_p6 = por %p201_p3, %p45_p0  ;;  %s4842_s10 = smov [#allocation6]  }
   0xc   : > { %s5864_s30 = scalar_select %p4923_p4, 1, 0 }
   0xd   : > { %s5865_s8 = scalar_select %p4928_p6, 1, 0 }
   0xe   : > { %p4933_p8 = pnand %p3277_p5, %p208_p7  ;;  %s220_s11 = sshll.u32 %s4842_s10, 4  ;;  %s4937_s11 = int_to_ptr.vmem [resolvable:$true] %s220_s11 }
   0xf   : > { %5866 = sst [smem:[#allocation16_spill]] %s5865_s8  ;;  %s4843_s13 = smov [#allocation8]  }
  0x10   : > { %s5867_s9 = scalar_select %p4933_p8, 1, 0 }
  0x11   : > { %p4569_p9 = pneg %p4933_p8  ;;  %s236_s14 = sshll.u32 %s4843_s13, 4  ;;  %s4948_s14 = int_to_ptr.vmem [resolvable:$true] %s236_s14 }
  0x12   : > { %s4844_s15 = smov [#allocation9]   ;;  %s4652_s19 = scalar_lea.hbm %s5820_s1, 2048 }
  0x13   : > { %p4944_p11 = pnand %p4569_p9, %p5827_p1  ;;  %s4950_s16 = sshll.u32 %s4844_s15, 4  ;;  %s253_s16 = int_to_ptr.vmem [resolvable:$true] %s4950_s16 }
  0x14   : > { %p4653_p12 = scmp.ne.s32.totalorder %s5820_s1, %s4652_s19  ;;  %p4659_p5 = scmp.lt.u32.totalorder %s4652_s19, %s5820_s1 }
  0x15   : > { %p4960_p13 = pneg %p4944_p11 }
  0x17   : > { %p4655_p0 = pnand %p4960_p13, %p4653_p12 }
  0x19   : > { %p4656_p3 = pneg %p4655_p0 }
  0x1b   : > { %p4661_p7 = pnand %p4659_p5, %p4656_p3 }
  0x1d   : > { %4664 = shalt.err (!%p4661_p7)
}
  0x1e   : > { %s4665_s10 = scalar_lea.vmem %s4937_s11, 2048  ;;  %p4673_p2 = scmp.lt.s32.totalorder %s4937_s11, %s4937_s11 }
  0x1f   : > { %p4666_p9 = scmp.ne.s32.totalorder %s4937_s11, %s4665_s10  ;;  %p4674_p6 = scmp.lt.s32.totalorder %s4665_s10, %s4665_s10 }
  0x21   : > { %p4668_p10 = pnand %p4666_p9, %p4960_p13  ;;  %p4675_p12 = por %p4674_p6, %p4673_p2 }
  0x23   : > { %p4669_p1 = pneg %p4668_p10 }
  0x25   : > { %p4676_p0 = pnand %p4675_p12, %p4669_p1 }
  0x27   : > { %4679 = shalt.err (!%p4676_p0)
}
  0x28   : > { %s4845_s13 = smov 128   ;;  %s4846_s15 = smov 8  }
  0x29   : > { %4572 = dma.hbm_to_vmem [thread:$0]  (!%p4944_p11), %s5820_s1, 2048, %s4937_s11, [#allocation7], %s4845_s13, %s4845_s13, %s4846_s15  }
  0x2a   : > { %s4680_s21 = scalar_lea.hbm %s5822_s3, 18432 }
  0x2b   : > { %p4681_p1 = scmp.ne.s32.totalorder %s5822_s3, %s4680_s21  ;;  %p4687_p10 = scmp.lt.u32.totalorder %s4680_s21, %s5822_s3 }
  0x2d   : > { %p4683_p2 = pnand %p4681_p1, %p4960_p13 }
  0x2f   : > { %p4684_p6 = pneg %p4683_p2 }
  0x31   : > { %p4689_p3 = pnand %p4687_p10, %p4684_p6 }
  0x33   : > { %4692 = shalt.err (!%p4689_p3)
}
  0x34   : > { %s4693_s11 = scalar_lea.vmem %s4948_s14, 18432  ;;  %p4701_p12 = scmp.lt.s32.totalorder %s4948_s14, %s4948_s14 }
  0x35   : > { %p4694_p5 = scmp.ne.s32.totalorder %s4948_s14, %s4693_s11  ;;  %p4702_p0 = scmp.lt.s32.totalorder %s4693_s11, %s4693_s11 }
  0x37   : > { %p4696_p7 = pnand %p4694_p5, %p4960_p13  ;;  %p4703_p1 = por %p4702_p0, %p4701_p12 }
  0x39   : > { %p4697_p9 = pneg %p4696_p7 }
  0x3b   : > { %p4704_p2 = pnand %p4703_p1, %p4697_p9 }
  0x3d   : > { %4707 = shalt.err (!%p4704_p2)
}
  0x3e   : > { %4575 = dma.hbm_to_vmem [thread:$0]  (!%p4944_p11), %s5822_s3, 18432, %s4948_s14, [#allocation7], %s4845_s13, %s4845_s13, %s4846_s15  }
  0x3f   : > { %s4708_s20 = scalar_lea.hbm %s5824_s5, 2048 }
  0x40   : > { %p4709_p6 = scmp.ne.s32.totalorder %s5824_s5, %s4708_s20  ;;  %p4715_p5 = scmp.lt.u32.totalorder %s4708_s20, %s5824_s5 }
  0x42   : > { %p4711_p10 = pnand %p4709_p6, %p4960_p13 }
  0x44   : > { %p4712_p3 = pneg %p4711_p10 }
  0x46   : > { %p4717_p7 = pnand %p4715_p5, %p4712_p3 }
  0x48   : > { %4720 = shalt.err (!%p4717_p7)
}
  0x49   : > { %s4721_s11 = scalar_lea.vmem %s253_s16, 2048  ;;  %p4729_p1 = scmp.lt.s32.totalorder %s253_s16, %s253_s16 }
  0x4a   : > { %p4722_p9 = scmp.ne.s32.totalorder %s253_s16, %s4721_s11  ;;  %p4730_p2 = scmp.lt.s32.totalorder %s4721_s11, %s4721_s11 }
  0x4c   : > { %p4724_p12 = pnand %p4722_p9, %p4960_p13  ;;  %p4731_p4 = por %p4730_p2, %p4729_p1 }
  0x4e   : > { %p4725_p0 = pneg %p4724_p12 }
  0x50   : > { %p4732_p8 = pnand %p4731_p4, %p4725_p0 }
  0x52   : > { %4735 = shalt.err (!%p4732_p8)
}
  0x53   : > { %4578 = dma.hbm_to_vmem [thread:$0]  (!%p4944_p11), %s5824_s5, 2048, %s253_s16, [#allocation10], %s4845_s13, %s4845_s13, %s4846_s15  }
  0x54   : > { %s5033_s22 = sadd.s32 1, %s4840_s27   ;;  %s32_s17 = sadd.s32 1, %s4836_s26 }
  0x55   : > { %s29_s12 = ssub.s32 %s4840_s27, %s5033_s22  ;;  %p39_p8 = scmp.ne.s32.totalorder %s4836_s26, %s4832_s25 }
  0x56   : > { %p30_p4 = scmp.eq.s32.totalorder %s29_s12, 0  ;;  %p40_p13 = scmp.eq.s32.totalorder %s4840_s27, 0 }
  0x57   : > { %p4590_p6 = scmp.lt.s32.totalorder %s4840_s27, 2  ;;  %p5870_p3 = scmp.eq.s32.totalorder %s4914_s28, 1 }
  0x58   : > { %s5043_s18 = scalar_select %p30_p4, %s4836_s26, %s32_s17  }
  0x59   : > { %p41_p10 = por %p40_p13, %p39_p8  ;;  %p5047_p5 = por %p5870_p3, %p39_p8 }
  0x5a   : > { %s269_s20 = sand.u32 1, %s4836_s26   ;;  %s3310_s21 = sshll.u32 %s4840_s27, 10 }
  0x5b   : > { %s3282_s16 = sshll.u32 %s269_s20, 6  ;;  %s5056_s10 = scalar_lea.hbm %s5819_s0, %s3310_s21 }
  0x5c   : > { %s273_s11 = scalar_lea.vmem [#allocation3], %s3282_s16  ;;  %p5058_p11 = pnand %p4590_p6, %p41_p10 }
  0x5d   : > { %s280_s14 = sshll.u32 %s273_s11, 4  ;;  %s5064_s12 = scalar_lea.sflag [#allocation4], %s269_s20  ;;  %s5062_s14 = int_to_ptr.vmem [resolvable:$true] %s280_s14 }
  0x5e   : > { %s4736_s17 = scalar_lea.hbm %s5056_s10, 1024  ;;  %p4738_p9 = pneg %p5058_p11 }
  0x5f   : > { %p4737_p7 = scmp.ne.s32.totalorder %s5056_s10, %s4736_s17  ;;  %s4741_s23 = scalar_lea.hbm %s5819_s0, 2048 }
  0x60   : > { %p4742_p1 = scmp.lt.u32.totalorder %s5056_s10, %s5819_s0  ;;  %p4743_p2 = scmp.lt.u32.totalorder %s4741_s23, %s4736_s17 }
  0x61   : > { %p4739_p12 = pnand %p4738_p9, %p4737_p7  ;;  %p4745_p8 = scmp.lt.u32.totalorder %s4736_s17, %s5056_s10 }
  0x62   : > { %p4744_p4 = por %p4743_p2, %p4742_p1 }
  0x63   : > { %p4740_p0 = pneg %p4739_p12 }
  0x64   : > { %p4746_p13 = por %p4745_p8, %p4744_p4 }
  0x66   : > { %p4747_p6 = pnand %p4746_p13, %p4740_p0 }
  0x68   : > { %4750 = shalt.err (!%p4747_p6)
}
  0x69   : > { %s4751_s20 = scalar_lea.vmem %s5062_s14, 1024  ;;  %s4847_s21 = smov [#allocation3]  }
  0x6a   : > { %p4752_p10 = scmp.ne.s32.totalorder %s5062_s14, %s4751_s20  ;;  %s4756_s16 = sshll.u32 %s4847_s21, 4  ;;  %s4757_s16 = int_to_ptr.vmem [resolvable:$false] %s4756_s16 }
  0x6b   : > { %s4758_s29 = scalar_lea.vmem %s4757_s16, 2048  ;;  %p4759_p12 = scmp.lt.s32.totalorder %s5062_s14, %s4757_s16 }
  0x6c   : > { %p4754_p3 = pnand %p4752_p10, %p4738_p9  ;;  %p4760_p1 = scmp.lt.s32.totalorder %s4758_s29, %s4751_s20 }
  0x6e   : > { %p4755_p7 = pneg %p4754_p3  ;;  %p4761_p2 = por %p4760_p1, %p4759_p12 }
  0x70   : > { %p4762_p4 = pnand %p4761_p2, %p4755_p7 }
  0x72   : > { %4765 = shalt.err (!%p4762_p4)
}
  0x73   : > { %4582 = dma.hbm_to_vmem [thread:$0]  (!%p5058_p11), %s5056_s10, 1024, %s5062_s14, %s5064_s12, %s4845_s13, %s4845_s13, %s4846_s15  }
  0x74   : > { %p5873_p9 = scmp.ne.s32.totalorder %s5867_s9, 0 }
  0x76   : > { %292 = sbr.rel (%p5873_p9) target bundleno = 1039 (0x40f), region = 48 }
  0x7d   : > { %s5098_s17 = sand.u32 1, %s4832_s25   ;;  %p5874_p0 = scmp.ne.s32.totalorder %s5864_s30, 0 }
  0x7e   : > { %s3286_s23 = sshll.u32 %s5098_s17, 6  ;;  %s295_s11 = scalar_lea.sflag [#allocation4], %s5098_s17 }
  0x7f   : > { %s5104_s8 = scalar_lea.vmem [#allocation3], %s3286_s23 }
  0x80   : > { %4811 = dma.done.wait (%p5874_p0), %s295_s11, 1024  }
  0x81   : > { %4813 = vsyncadd (%p5874_p0), %s295_s11, 4294966272  ;;  %p5875_p11 = scmp.eq.s32.totalorder %s4914_s28, 0 }
  0x83   : > { %4815 = dma.done.wait (%p5875_p11), [#allocation7], 20480   ;;  %p5876_p8 = pmov %p5875_p11 }
  0x85   : > { %4817 = vsyncadd (%p5876_p8), [#allocation7], 4294946816  ;;  %p5877_p13 = pmov %p5876_p8 }
  0x86   : > { %p5878_p6 = pmov %p5876_p8 }
  0x87   : > { %4819 = dma.done.wait (%p5877_p13), [#allocation10], 2048  }
  0x88   : > { %4821 = vsyncadd (%p5878_p6), [#allocation10], 4294965248  ;;  %v4848_v0 = vmov 0.0   ;;  %v349_v1 = vld [vmem:[#allocation6] sm:$0xff]  ;;  %v350_v2 = vld [vmem:[#allocation6 + $0x8] sm:$0xff]  ;;  %vm1015_vm0 = vcmask 1046528  }
  0x89   : > { %486 = vst [vmem:[#allocation2 + $0x8] sm:$0x3] %v4848_v0  ;;  %487 = vst [vmem:[#allocation2 + $0x10] sm:$0xff] %v4848_v0  ;;  %v351_v3 = vld [vmem:[#allocation6 + $0x10] sm:$0xff]  ;;  %v4105_v4 = vpack.c.bf16 %v350_v2, %v349_v1  ;;  %v352_v5 = vld [vmem:[#allocation6 + $0x18] sm:$0xff]  ;;  %s5752_s12 = scalar_lea.vmem [#allocation11], %s3286_s23 }
  0x8a   : > { %488 = vst [vmem:[#allocation2 + $0x18] sm:$0x3] %v4848_v0  ;;  %489 = vst [vmem:[#allocation2 + $0x20] sm:$0xff] %v4848_v0  ;;  %v4109_v6 = vpack.c.bf16 %v352_v5, %v351_v3  ;;  %v353_v7 = vld [vmem:[#allocation6 + $0x20] sm:$0xff]  ;;  %v354_v8 = vld [vmem:[#allocation6 + $0x28] sm:$0xff]  ;;  %s3174_s20 = sshll.u32 %s5752_s12, 4  ;;  %s5767_s20 = int_to_ptr.vmem [resolvable:$true] %s3174_s20 }
  0x8b   : > { %490 = vst [vmem:[#allocation2 + $0x28] sm:$0x3] %v4848_v0  ;;  %491 = vst [vmem:[#allocation2 + $0x30] sm:$0xff] %v4848_v0  ;;  %4106 = vmatprep.subr.bf16.mxu0 %v4105_v4  ;;  %v4113_v9 = vpack.c.bf16 %v354_v8, %v353_v7  ;;  %v341_v10 = vld [vmem:[%s5104_s8] sm:$0xff]  ;;  %v355_v11 = vld [vmem:[#allocation6 + $0x30] sm:$0xff]  ;;  %s3311_s21 = sshll.u32 %s4914_s28, 10 }
  0x8c   : > { %492 = vst [vmem:[#allocation2 + $0x38] sm:$0x3] %v4848_v0  ;;  %493 = vst [vmem:[#allocation2 + $0x40] sm:$0xff] %v4848_v0  ;;  %4108 = vmatpush3.bf16.msra.mxu0 %v4105_v4  ;;  %v356_v12 = vld [vmem:[#allocation6 + $0x38] sm:$0xff]  ;;  %3626 = vmatprep.mubr.f32.mxu0 %v341_v10  ;;  %v1770_v13 = vld [vmem:[#allocation8 + $0x200] sm:$0xff]  ;;  %s5773_s23 = scalar_lea.hbm %s5826_s7, %s3311_s21  ;;  %s3161_s11 = scalar_lea.sflag [#allocation5], %s5098_s17 }
  0x8d   : > { %494 = vst [vmem:[#allocation2 + $0x48] sm:$0x3] %v4848_v0  ;;  %495 = vst [vmem:[#allocation2 + $0x50] sm:$0xff] %v4848_v0  ;;  %4110 = vmatprep.subr.bf16.mxu0 %v4109_v6  ;;  %v4117_v14 = vpack.c.bf16 %v356_v12, %v355_v11  ;;  %v1771_v15 = vld [vmem:[#allocation8 + $0x208] sm:$0xff]  ;;  %v357_v16 = vld [vmem:[#allocation6 + $0x40] sm:$0xff]  ;;  %s4766_s28 = scalar_lea.vmem %s5767_s20, 1024 }
  0x8e   : > { %496 = vst [vmem:[#allocation2 + $0x58] sm:$0x3] %v4848_v0  ;;  %497 = vst [vmem:[#allocation2 + $0x60] sm:$0xff] %v4848_v0  ;;  %v358_v17 = vld [vmem:[#allocation6 + $0x48] sm:$0xff]  ;;  %v4265_v18 = vpack.c.bf16 %v1771_v15, %v1770_v13  ;;  %v359_v20 = vld [vmem:[#allocation6 + $0x50] sm:$0xff]  ;;  %p4767_p10 = scmp.ne.s32.totalorder %s5767_s20, %s4766_s28  ;;  %s4850_s30 = smov [#allocation11]  }
  0x8f   : > { %498 = vst [vmem:[#allocation2 + $0x68] sm:$0x3] %v4848_v0  ;;  %499 = vst [vmem:[#allocation2 + $0x70] sm:$0xff] %v4848_v0  ;;  %v4121_v19 = vpack.c.bf16 %v358_v17, %v357_v16  ;;  %v360_v21 = vld [vmem:[#allocation6 + $0x58] sm:$0xff]  ;;  %v361_v23 = vld [vmem:[#allocation6 + $0x60] sm:$0xff]  ;;  %s4770_s9 = sshll.u32 %s4850_s30, 4  ;;  %s4771_s9 = int_to_ptr.vmem [resolvable:$false] %s4770_s9 }
  0x90   : > { %500 = vst [vmem:[#allocation2 + $0x78] sm:$0x3] %v4848_v0  ;;  %501 = vst [vmem:[#allocation2 + $0x80] sm:$0xff] %v4848_v0  ;;  %4112 = vmatpush3.bf16.msra.mxu0 %v4109_v6  ;;  %4266 = vmatprep.subr.bf16.mxu1 %v4265_v18  ;;  %v4125_v22 = vpack.c.bf16 %v360_v21, %v359_v20  ;;  %v362_v24 = vld [vmem:[#allocation6 + $0x68] sm:$0xff]  ;;  %v363_v26 = vld [vmem:[#allocation6 + $0x70] sm:$0xff]  ;;  %p4768_p3 = pnand %p4767_p10, %p5047_p5  ;;  %p4773_p12 = scmp.lt.s32.totalorder %s5767_s20, %s4771_s9 }
  0x91   : > { %502 = vst [vmem:[#allocation2 + $0x88] sm:$0x3] %v4848_v0  ;;  %504 = vst [vmem:[#allocation2 + $0x98] sm:$0x3] %v4848_v0  ;;  %4114 = vmatprep.subr.bf16.mxu0 %v4113_v9  ;;  %4268 = vmatpush3.bf16.msra.mxu1 %v4265_v18  ;;  %v4129_v25 = vpack.c.bf16 %v362_v24, %v361_v23  ;;  %v364_v27 = vld [vmem:[#allocation6 + $0x78] sm:$0xff]  ;;  %v822_v29 = vld [vmem:[#allocation8 + $0x80] sm:$0xff] }
  0x92   : > { %505 = vst [vmem:[#allocation2 + $0xa0] sm:$0xff] %v4848_v0  ;;  %v4133_v28 = vpack.c.bf16 %v364_v27, %v363_v26  ;;  %v823_v30 = vld [vmem:[#allocation8 + $0x88] sm:$0xff]  ;;  %v343_v33 = vld [vmem:[%s5104_s8 + $0x10] sm:$0xff]  ;;  %v344_v34 = vld [vmem:[%s5104_s8 + $0x18] sm:$0xff]  ;;  %v4849_v24 = vmov 1983009808   ;;  %v562_v26 = vlaneseq  ;;  %p4769_p7 = pneg %p4768_p3 }
  0x93   : > { %v4137_v31 = vpack.c.bf16 %v823_v30, %v822_v29  ;;  %v342_v32 = vld [vmem:[%s5104_s8 + $0x8] sm:$0xff]  ;;  %v345_v35 = vld [vmem:[%s5104_s8 + $0x20] sm:$0xff]  ;;  %v347_v37 = vld [vmem:[%s5104_s8 + $0x30] sm:$0xff]  ;;  %v558_v29 = vcombine.high %v4848_v0, %v4848_v0 }
  0x94   : > { %4116 = vmatpush3.bf16.msra.mxu0 %v4113_v9  ;;  %v346_v36 = vld [vmem:[%s5104_s8 + $0x28] sm:$0xff]  ;;  %v348_v38 = vld [vmem:[%s5104_s8 + $0x38] sm:$0xff]  ;;  %v824_v39 = vld [vmem:[#allocation8 + $0x90] sm:$0xff] }
  0x95   : > { %4118 = vmatprep.subr.bf16.mxu0 %v4117_v14  ;;  %v825_v40 = vld [vmem:[#allocation8 + $0x98] sm:$0xff]  ;;  %v1772_v42 = vld [vmem:[#allocation8 + $0x210] sm:$0xff]  ;;  %v826_v45 = vld [vmem:[#allocation8 + $0xa0] sm:$0xff] }
  0x96   : > { %v4141_v41 = vpack.c.bf16 %v825_v40, %v824_v39  ;;  %v1773_v43 = vld [vmem:[#allocation8 + $0x218] sm:$0xff]  ;;  %v827_v46 = vld [vmem:[#allocation8 + $0xa8] sm:$0xff]  ;;  %v1774_v48 = vld [vmem:[#allocation8 + $0x220] sm:$0xff] }
  0x97   : > { %v4269_v44 = vpack.c.bf16 %v1773_v43, %v1772_v42  ;;  %v4145_v47 = vpack.c.bf16 %v827_v46, %v826_v45  ;;  %v1775_v49 = vld [vmem:[#allocation8 + $0x228] sm:$0xff]  ;;  %v828_v51 = vld [vmem:[#allocation8 + $0xb0] sm:$0xff]  ;;  %v829_v52 = vld [vmem:[#allocation8 + $0xb8] sm:$0xff] }
  0x98   : > { %4120 = vmatpush3.bf16.msra.mxu0 %v4117_v14  ;;  %v4273_v50 = vpack.c.bf16 %v1775_v49, %v1774_v48  ;;  %v4149_v53 = vpack.c.bf16 %v829_v52, %v828_v51  ;;  %v1776_v54 = vld [vmem:[#allocation8 + $0x230] sm:$0xff]  ;;  %v1777_v55 = vld [vmem:[#allocation8 + $0x238] sm:$0xff]  ;;  %v830_v57 = vld [vmem:[#allocation8 + $0xc0] sm:$0xff] }
  0x99   : > { %4122 = vmatprep.subr.bf16.mxu0 %v4121_v19  ;;  %4270 = vmatprep.subr.bf16.mxu1 %v4269_v44  ;;  %v4277_v56 = vpack.c.bf16 %v1777_v55, %v1776_v54  ;;  %v831_v58 = vld [vmem:[#allocation8 + $0xc8] sm:$0xff]  ;;  %v1778_v60 = vld [vmem:[#allocation8 + $0x240] sm:$0xff]  ;;  %v832_v63 = vld [vmem:[#allocation8 + $0xd0] sm:$0xff] }
  0x9a   : > { %4272 = vmatpush3.bf16.msra.mxu1 %v4269_v44  ;;  %v4153_v59 = vpack.c.bf16 %v831_v58, %v830_v57  ;;  %v1779_v61 = vld [vmem:[#allocation8 + $0x248] sm:$0xff]  ;;  %v833_v1 = vld [vmem:[#allocation8 + $0xd8] sm:$0xff]  ;;  %v1780_v3 = vld [vmem:[#allocation8 + $0x250] sm:$0xff] }
  0x9b   : > { %4274 = vmatprep.subr.bf16.mxu1 %v4273_v50  ;;  %v4281_v62 = vpack.c.bf16 %v1779_v61, %v1778_v60  ;;  %v4157_v2 = vpack.c.bf16 %v833_v1, %v832_v63  ;;  %v1781_v4 = vld [vmem:[#allocation8 + $0x258] sm:$0xff]  ;;  %v834_v6 = vld [vmem:[#allocation8 + $0xe0] sm:$0xff]  ;;  %v835_v7 = vld [vmem:[#allocation8 + $0xe8] sm:$0xff] }
  0x9c   : > { %4124 = vmatpush3.bf16.msra.mxu0 %v4121_v19  ;;  %v4285_v5 = vpack.c.bf16 %v1781_v4, %v1780_v3  ;;  %v4161_v8 = vpack.c.bf16 %v835_v7, %v834_v6  ;;  %v1782_v9 = vld [vmem:[#allocation8 + $0x260] sm:$0xff]  ;;  %v1783_v10 = vld [vmem:[#allocation8 + $0x268] sm:$0xff]  ;;  %v836_v11 = vld [vmem:[#allocation8 + $0xf0] sm:$0xff] }
  0x9d   : > { %4126 = vmatprep.subr.bf16.mxu0 %v4125_v22  ;;  %v4289_v12 = vpack.c.bf16 %v1783_v10, %v1782_v9  ;;  %v837_v13 = vld [vmem:[#allocation8 + $0xf8] sm:$0xff]  ;;  %v1784_v14 = vld [vmem:[#allocation8 + $0x270] sm:$0xff]  ;;  %v805_v18 = vld [vmem:[#allocation8] sm:$0xff] }
  0x9e   : > { %4276 = vmatpush3.bf16.msra.mxu1 %v4273_v50  ;;  %v1785_v15 = vld [vmem:[#allocation8 + $0x278] sm:$0xff]  ;;  %v4165_v16 = vpack.c.bf16 %v837_v13, %v836_v11  ;;  %v806_v19 = vld [vmem:[#allocation8 + $0x8] sm:$0xff]  ;;  %v1950_v21 = vld [vmem:[#allocation8 + $0x280] sm:$0xff] }
  0x9f   : > { %4278 = vmatprep.subr.bf16.mxu1 %v4277_v56  ;;  %v4293_v17 = vpack.c.bf16 %v1785_v15, %v1784_v14  ;;  %v5145_v20 = vpack.c.bf16 %v806_v19, %v805_v18  ;;  %v807_v46 = vld [vmem:[#allocation8 + $0x10] sm:$0xff]  ;;  %v1953_v52 = vld [vmem:[#allocation8 + $0x298] sm:$0xff]  ;;  %v810_v54 = vld [vmem:[#allocation8 + $0x28] sm:$0xff] }
  0xa0   : > { %4128 = vmatpush3.bf16.msra.mxu0 %v4125_v22  ;;  %v1951_v22 = vld [vmem:[#allocation8 + $0x288] sm:$0xff]  ;;  %v1952_v51 = vld [vmem:[#allocation8 + $0x290] sm:$0xff]  ;;  %v1954_v55 = vld [vmem:[#allocation8 + $0x2a0] sm:$0xff] }
  0xa1   : > { %4130 = vmatprep.subr.bf16.mxu0 %v4129_v25  ;;  %v5148_v23 = vpack.c.bf16 %v1951_v22, %v1950_v21  ;;  %v811_v58 = vld [vmem:[#allocation8 + $0x30] sm:$0xff]  ;;  %v813_v63 = vld [vmem:[#allocation8 + $0x40] sm:$0xff]  ;;  %v814_v1 = vld [vmem:[#allocation8 + $0x48] sm:$0xff]  ;;  %v5198_v15 = vpack.c.bf16 %v1953_v52, %v1952_v51 }
  0xa2   : > { %4280 = vmatpush3.bf16.msra.mxu1 %v4277_v56  ;;  %v1955_v56 = vld [vmem:[#allocation8 + $0x2a8] sm:$0xff]  ;;  %v1956_v60 = vld [vmem:[#allocation8 + $0x2b0] sm:$0xff]  ;;  %v1958_v4 = vld [vmem:[#allocation8 + $0x2c0] sm:$0xff] }
  0xa3   : > { %4282 = vmatprep.subr.bf16.mxu1 %v4281_v62  ;;  %v815_v6 = vld [vmem:[#allocation8 + $0x50] sm:$0xff]  ;;  %v816_v11 = vld [vmem:[#allocation8 + $0x58] sm:$0xff]  ;;  %v817_v18 = vld [vmem:[#allocation8 + $0x60] sm:$0xff] }
  0xa4   : > { %4132 = vmatpush3.bf16.msra.mxu0 %v4129_v25  ;;  %v560_v25 = vunpack.c.l.s4 %v4849_v24  ;;  %v1961_v13 = vld [vmem:[#allocation8 + $0x2d8] sm:$0xff]  ;;  %v818_v19 = vld [vmem:[#allocation8 + $0x68] sm:$0xff] }
  0xa5   : > { %4134 = vmatprep.subr.bf16.mxu0 %v4133_v28  ;;  %v5204_v22 = vld.sshfl [vmem:[#allocation2 + $0x8] sm:$0x3 pattern:$0x76325410] }
  0xa6   : > { %4284 = vmatpush3.bf16.msra.mxu1 %v4281_v62  ;;  %v561_v27 = vunpack.c.0.s8 %v560_v25  ;;  %v1957_v62 = vld [vmem:[#allocation8 + $0x2b8] sm:$0xff] }
  0xa7   : > { %4286 = vmatprep.subr.bf16.mxu1 %v4285_v5  ;;  %v5208_v25 = vpack.c.bf16 %v1957_v62, %v1956_v60 }
  0xa8   : > { %4136 = vmatpush3.bf16.msra.mxu0 %v4133_v28  ;;  %v563_v28 = vshrl.u32 %v562_v26, 7  ;;  %v5210_v26 = vpack.c.bf16 %v814_v1, %v813_v63 }
  0xa9   : > { %4138 = vmatprep.subr.bf16.mxu0 %v4137_v31 }
  0xaa   : > { %4288 = vmatpush3.bf16.msra.mxu1 %v4285_v5  ;;  %v5153_v30 = vsub.s32 %v561_v27, %v563_v28  ;;  %v1959_v5 = vld [vmem:[#allocation8 + $0x2c8] sm:$0xff]  ;;  %v1962_v27 = vld [vmem:[#allocation8 + $0x2e0] sm:$0xff] }
  0xab   : > { %3627 = vmatmul.mubr.f32.vlgmr.msra.gmra.mrb[0].mxu0 %v342_v32  ;;  %4290 = vmatprep.subr.bf16.mxu1 %v4289_v12  ;;  %v1963_v28 = vld [vmem:[#allocation8 + $0x2e8] sm:$0xff] }
  0xac   : > { %3629 = vmatprep.mubr.f32.mxu0 %v343_v33  ;;  %4140 = vmatpush3.bf16.msra.mxu0 %v4137_v31  ;;  %v5157_v31 = vrot.slane %v4848_v0, %v5153_v30  ;;  %v5160_v32 = vrot.slane %v558_v29, %v5153_v30  ;;  %v5177_v0 = vld [vmem:[%s5821_s2] ss:$0 sm:$0xff] }
  0xad   : > { %4142 = vmatprep.subr.bf16.mxu0 %v4141_v41 }
  0xae   : > { %4292 = vmatpush3.bf16.msra.mxu1 %v4289_v12  ;;  %5879 = vst [vmem:[#allocation17_spill] sm:$0xff] %v5157_v31  ;;  %v5164_v33 = vcombine.high %v5157_v31, %v5157_v31  ;;  %v1960_v12 = vld [vmem:[#allocation8 + $0x2d0] sm:$0xff] }
  0xaf   : > { %3630 = vmatmul.mubr.f32.gmra.mrb[2].mxu0 %v344_v34  ;;  %4294 = vmatprep.subr.bf16.mxu1 %v4293_v17  ;;  %v5168_v34 = vcombine.high %v5160_v32, %v5160_v32 }
  0xb0   : > { %3632 = vmatprep.mubr.f32.mxu0 %v345_v35  ;;  %4144 = vmatpush3.bf16.msra.mxu0 %v4141_v41  ;;  %v838_v35 = vcombine.low %v5157_v31, %v5164_v33 }
  0xb1   : > { %4146 = vmatprep.subr.bf16.mxu0 %v4145_v47 }
  0xb2   : > { %4296 = vmatpush3.bf16.msra.mxu1 %v4293_v17  ;;  %v5181_v40 = vrot.slane %v838_v35, %v5153_v30  ;;  %v5202_v17 = vpack.c.bf16 %v1955_v56, %v1954_v55 }
  0xb3   : > { %3633 = vmatmul.mubr.f32.gmra.mrb[4].mxu0 %v346_v36  ;;  %4298 = vmatprep.subr.bf16.mxu1 %v5148_v23  ;;  %v839_v36 = vcombine.low %v5160_v32, %v5168_v34 }
  0xb4   : > { %3635 = vmatprep.mubr.f32.mxu0 %v347_v37  ;;  %4148 = vmatpush3.bf16.msra.mxu0 %v4145_v47  ;;  %5880 = vst [vmem:[#allocation18_spill] sm:$0xff] %v5181_v40  ;;  %v808_v47 = vld [vmem:[#allocation8 + $0x18] sm:$0xff] }
  0xb5   : > { %4150 = vmatprep.subr.bf16.mxu0 %v4149_v53  ;;  %v5184_v41 = vrot.slane %v839_v36, %v5153_v30  ;;  %v5195_v10 = vpack.c.bf16 %v808_v47, %v807_v46 }
  0xb7   : > { %3636 = vmatmul.mubr.f32.gmra.mrb[6].mxu0 %v348_v38  ;;  %5881 = vst [vmem:[#allocation19_spill] sm:$0xff] %v5184_v41  ;;  %v5190_v50 = vcombine.low %v5181_v40, %v5184_v41 }
  0xb8   : > { %4152 = vmatpush3.bf16.msra.mxu0 %v4149_v53  ;;  %v809_v53 = vld [vmem:[#allocation8 + $0x20] sm:$0xff] }
  0xb9   : > { %4154 = vmatprep.subr.bf16.mxu0 %v4153_v59  ;;  %v1016_v9 = vrot.slane %v5190_v50, 1 }
  0xbc   : > { %4156 = vmatpush3.bf16.msra.mxu0 %v4153_v59  ;;  %v812_v59 = vld [vmem:[#allocation8 + $0x38] sm:$0xff] }
  0xbd   : > { %4158 = vmatprep.subr.bf16.mxu0 %v4157_v2  ;;  %v5206_v24 = vpack.c.bf16 %v812_v59, %v811_v58 }
  0xc0   : > { %4160 = vmatpush3.bf16.msra.mxu0 %v4157_v2 }
  0xc1   : > { %4162 = vmatprep.subr.bf16.mxu0 %v4161_v8 }
  0xc4   : > { %4164 = vmatpush3.bf16.msra.mxu0 %v4161_v8 }
  0xc5   : > { %4166 = vmatprep.subr.bf16.mxu0 %v4165_v16 }
  0xc8   : > { %4168 = vmatpush3.bf16.msra.mxu0 %v4165_v16  ;;  %v5200_v16 = vpack.c.bf16 %v810_v54, %v809_v53  ;;  %v5224_v53 = vpack.c.bf16 %v1963_v28, %v1962_v27 }
  0xc9   : > { %4170 = vmatprep.subr.bf16.mxu0 %v5145_v20 }
 0x17e   : > { %v3628_v37 = vpop.f32.mrb[0].mxu0 }
 0x17f   : > { %v444_v38 = vadd.f32 %v3628_v37, %v5177_v0  ;;  %v438_v39 = vpop.f32.mrb[1].mxu0  ;;  %v5212_v37 = vpack.c.bf16 %v1959_v5, %v1958_v4 }
 0x180   : > { %v439_v42 = vadd.f32 %v5177_v0, %v438_v39  ;;  %v5216_v39 = vpack.c.bf16 %v1961_v13, %v1960_v12 }
 0x181   : > { %v478_v43 = vmax.f32 %v444_v38, 0.0  ;;  %v5214_v38 = vpack.c.bf16 %v816_v11, %v815_v6 }
 0x182   : > { %v477_v44 = vmax.f32 %v439_v42, 0.0  ;;  %v3631_v45 = vpop.f32.mrb[2].mxu0 }
 0x183   : > { %509 = vst [vmem:[#allocation2 + $0x21] sm:$0xff] %v478_v43  ;;  %v454_v48 = vadd.f32 %v3631_v45, %v5177_v0  ;;  %v448_v49 = vpop.f32.mrb[3].mxu0 }
 0x184   : > { %508 = vst [vmem:[#allocation2 + $0x11] sm:$0xff] %v477_v44  ;;  %v449_v57 = vadd.f32 %v5177_v0, %v448_v49 }
 0x185   : > { %v480_v61 = vmax.f32 %v454_v48, 0.0  ;;  %v5220_v48 = vpack.c.bf16 %v818_v19, %v817_v18 }
 0x186   : > { %v479_v2 = vmax.f32 %v449_v57, 0.0  ;;  %v3634_v3 = vpop.f32.mrb[4].mxu0 }
 0x187   : > { %511 = vst [vmem:[#allocation2 + $0x41] sm:$0xff] %v480_v61  ;;  %v464_v7 = vadd.f32 %v3634_v3, %v5177_v0  ;;  %v458_v8 = vpop.f32.mrb[5].mxu0 }
 0x188   : > { %510 = vst [vmem:[#allocation2 + $0x31] sm:$0xff] %v479_v2  ;;  %v459_v14 = vadd.f32 %v5177_v0, %v458_v8 }
 0x189   : > { %v482_v21 = vmax.f32 %v464_v7, 0.0 }
 0x18a   : > { %v481_v29 = vmax.f32 %v459_v14, 0.0  ;;  %v3637_v35 = vpop.f32.mrb[6].mxu0  ;;  %v520_v36 = vld [vmem:[#allocation2 + $0x20] sm:$0xff] }
 0x18b   : > { %513 = vst [vmem:[#allocation2 + $0x61] sm:$0xff] %v482_v21  ;;  %v474_v42 = vadd.f32 %v3637_v35, %v5177_v0  ;;  %v468_v43 = vpop.f32.mrb[7].mxu0  ;;  %v518_v44 = vld [vmem:[#allocation2 + $0x10] sm:$0xff]  ;;  %v613_v46 = vrot.slane %v520_v36, %v5153_v30  ;;  %v606_v47 = vcombine.high %v520_v36, %v520_v36 }
 0x18c   : > { %v3293_v45 = vld.sshfl [vmem:[#allocation2 + $0x18] sm:$0x3 pattern:$0x76325410]  ;;  %512 = vst [vmem:[#allocation2 + $0x51] sm:$0xff] %v481_v29  ;;  %v469_v49 = vadd.f32 %v5177_v0, %v468_v43  ;;  %v582_v51 = vcombine.high %v518_v44, %v518_v44  ;;  %v589_v52 = vrot.slane %v518_v44, %v5153_v30 }
 0x18d   : > { %v484_v54 = vmax.f32 %v474_v42, 0.0  ;;  %v621_v55 = vcombine.high %v613_v46, %v613_v46  ;;  %v620_v56 = vrot.slane %v606_v47, %v5153_v30  ;;  %v1338_v57 = vcombine.low %v3293_v45, %v613_v46  ;;  %v3294_v21 = vld.sshfl [vmem:[#allocation2 + $0x28] sm:$0x3 pattern:$0x76325410] }
 0x18e   : > { %v483_v58 = vmax.f32 %v469_v49, 0.0  ;;  %v596_v59 = vrot.slane %v582_v51, %v5153_v30  ;;  %v597_v60 = vcombine.high %v589_v52, %v589_v52  ;;  %v855_v61 = vcombine.low %v5204_v22, %v589_v52 }
 0x18f   : > { %515 = vst [vmem:[#allocation2 + $0x81] sm:$0xff] %v484_v54  ;;  %v873_v62 = vcombine.low %v613_v46, %v621_v55  ;;  %v1339_v0 = vcombine.low %v621_v55, %v620_v56  ;;  %v1346_v63 = vrot.slane %v1338_v57, %v5153_v30  ;;  %v522_v1 = vld [vmem:[#allocation2 + $0x30] sm:$0xff]  ;;  %v622_v2 = vcombine.high %v620_v56, %v620_v56  ;;  %v3295_v57 = vld.sshfl [vmem:[#allocation2 + $0x38] sm:$0x3 pattern:$0x76325410] }
 0x190   : > { %514 = vst [vmem:[#allocation2 + $0x71] sm:$0xff] %v483_v58  ;;  %v856_v3 = vcombine.low %v597_v60, %v596_v59  ;;  %v863_v4 = vrot.slane %v855_v61, %v5153_v30  ;;  %v598_v5 = vcombine.high %v596_v59, %v596_v59  ;;  %v1321_v6 = vcombine.low %v589_v52, %v597_v60 }
 0x191   : > { %v5232_v7 = vrot.slane %v873_v62, %v5153_v30  ;;  %v5235_v8 = vrot.slane %v1339_v0, %v5153_v30  ;;  %v637_v11 = vrot.slane %v522_v1, %v5153_v30  ;;  %v889_v12 = vcombine.low %v620_v56, %v622_v2 }
 0x192   : > { %v5239_v13 = vrot.slane %v856_v3, %v5153_v30  ;;  %v872_v14 = vcombine.low %v598_v5, %v3293_v45  ;;  %v1322_v18 = vcombine.low %v596_v59, %v598_v5  ;;  %v1329_v19 = vrot.slane %v1321_v6, %v5153_v30  ;;  %v524_v45 = vld [vmem:[#allocation2 + $0x40] sm:$0xff] }
 0x193   : > { %v5243_v27 = vcombine.low %v1346_v63, %v5235_v8  ;;  %v890_v28 = vcombine.low %v3294_v21, %v637_v11  ;;  %v5246_v29 = vrot.slane %v889_v12, %v5153_v30  ;;  %v1355_v35 = vcombine.low %v622_v2, %v3294_v21 }
 0x194   : > { %v5249_v36 = vcombine.low %v863_v4, %v5239_v13  ;;  %v5252_v42 = vrot.slane %v872_v14, %v5153_v30  ;;  %v1336_v43 = vrot.slane %v1322_v18, %v5153_v30  ;;  %v645_v44 = vcombine.high %v637_v11, %v637_v11  ;;  %v526_v14 = vld [vmem:[#allocation2 + $0x50] sm:$0xff] }
 0x195   : > { %5882 = vst [vmem:[#allocation20_spill] sm:$0xff] %v5243_v27  ;;  %v1794_v46 = vrot.slane %v5243_v27, 1  ;;  %v5257_v47 = vrot.slane %v890_v28, %v5153_v30  ;;  %v5260_v49 = vrot.slane %v1355_v35, %v5153_v30  ;;  %v630_v51 = vcombine.high %v522_v1, %v522_v1 }
 0x196   : > { %v1017_v52 = vrot.slane %v5249_v36, 1  ;;  %v5265_v54 = vcombine.low %v5252_v42, %v5232_v7  ;;  %v5267_v55 = vcombine.low %v1329_v19, %v1336_v43  ;;  %v1356_v56 = vcombine.low %v637_v11, %v645_v44 }
 0x197   : > { %v5271_v58 = vcombine.low %v5246_v29, %v5257_v47  ;;  %v644_v59 = vrot.slane %v630_v51, %v5153_v30  ;;  %v661_v60 = vrot.slane %v524_v45, %v5153_v30  ;;  %v654_v61 = vcombine.high %v524_v45, %v524_v45 }
 0x198   : > { %5883 = vst [vmem:[#allocation21_spill] sm:$0xff] %v5267_v55  ;;  %v1018_v62 = vsel %vm1015_vm0, %v1016_v9, %v1017_v52  ;;  %v1019_v0 = vrot.slane %v5265_v54, 1  ;;  %v1793_v63 = vrot.slane %v5267_v55, 1  ;;  %v5281_v1 = vrot.slane %v1356_v56, %v5153_v30 }
 0x199   : > { %3670 = vmatprep.mubr.f32.mxu0 %v1018_v62  ;;  %v1021_v2 = vrot.slane %v5271_v58, 1  ;;  %v646_v3 = vcombine.high %v644_v59, %v644_v59  ;;  %v906_v4 = vcombine.low %v645_v44, %v644_v59  ;;  %v1373_v5 = vcombine.low %v3295_v57, %v661_v60 }
 0x19a   : > { %v1020_v6 = vsel %vm1015_vm0, %v1017_v52, %v1019_v0  ;;  %v1795_v11 = vsel %vm1015_vm0, %v1793_v63, %v1794_v46  ;;  %v5288_v9 = vcombine.low %v5260_v49, %v5281_v1  ;;  %v668_v12 = vrot.slane %v654_v61, %v5153_v30 }
 0x19b   : > { %3671 = vmatmul.mubr.f32.vlgmr.msra.gmra.mrb[8].mxu0 %v1020_v6  ;;  %3858 = vmatprep.mubr.f32.mxu1 %v1795_v11  ;;  %v1022_v18 = vsel %vm1015_vm0, %v1019_v0, %v1021_v2  ;;  %v907_v19 = vcombine.low %v646_v3, %v3295_v57  ;;  %v5293_v21 = vrot.slane %v906_v4, %v5153_v30 }
 0x19c   : > { %5884 = vst [vmem:[#allocation22_spill] sm:$0xff] %v5288_v9  ;;  %4172 = vmatpush3.bf16.msra.mxu0 %v5145_v20  ;;  %3673 = vmatprep.mubr.f32.mxu0 %v1022_v18  ;;  %v1796_v28 = vrot.slane %v5288_v9, 1  ;;  %v1372_v35 = vcombine.low %v644_v59, %v646_v3  ;;  %v5298_v43 = vrot.slane %v1373_v5, %v5153_v30  ;;  %v3296_v59 = vld.sshfl [vmem:[#allocation2 + $0x48] sm:$0x3 pattern:$0x76325410] }
 0x19d   : > { %v669_v44 = vcombine.high %v661_v60, %v661_v60  ;;  %4174 = vmatprep.subr.bf16.mxu0 %v5195_v10  ;;  %v5302_v45 = vrot.slane %v907_v19, %v5153_v30  ;;  %v670_v51 = vcombine.high %v668_v12, %v668_v12  ;;  %v678_v52 = vcombine.high %v526_v14, %v526_v14 }
 0x19e   : > { %v685_v56 = vrot.slane %v526_v14, %v5153_v30  ;;  %v1797_v57 = vsel %vm1015_vm0, %v1794_v46, %v1796_v28  ;;  %v5307_v20 = vrot.slane %v1372_v35, %v5153_v30 }
 0x19f   : > { %v923_v61 = vcombine.low %v661_v60, %v669_v44  ;;  %v1389_v62 = vcombine.low %v669_v44, %v668_v12  ;;  %3859 = vmatmul.mubr.f32.vlgmr.msra.gmra.mrb[0].mxu1 %v1797_v57  ;;  %v5311_v0 = vcombine.low %v5293_v21, %v5302_v45  ;;  %v924_v63 = vcombine.low %v668_v12, %v670_v51  ;;  %v528_v12 = vld [vmem:[#allocation2 + $0x60] sm:$0xff] }
 0x1a0   : > { %v1390_v3 = vcombine.low %v670_v51, %v3296_v59  ;;  %v692_v4 = vrot.slane %v678_v52, %v5153_v30  ;;  %4300 = vmatpush3.bf16.msra.mxu1 %v5148_v23  ;;  %4176 = vmatpush3.bf16.msra.mxu0 %v5195_v10  ;;  %v5318_v46 = vcombine.low %v5307_v20, %v5298_v43 }
 0x1a1   : > { %v5321_v60 = vrot.slane %v923_v61, %v5153_v30  ;;  %v5324_v5 = vrot.slane %v1389_v62, %v5153_v30  ;;  %v1023_v6 = vrot.slane %v5311_v0, 1  ;;  %v5328_v11 = vrot.slane %v924_v63, %v5153_v30  ;;  %4302 = vmatprep.subr.bf16.mxu1 %v5198_v15  ;;  %4178 = vmatprep.subr.bf16.mxu0 %v5200_v16  ;;  %v3297_v61 = vld.sshfl [vmem:[#allocation2 + $0x58] sm:$0x3 pattern:$0x76325410] }
 0x1a2   : > { %5885 = vst [vmem:[#allocation23_spill] sm:$0xff] %v5318_v46  ;;  %v5332_v23 = vrot.slane %v1390_v3, %v5153_v30  ;;  %v693_v10 = vcombine.high %v685_v56, %v685_v56  ;;  %v1798_v14 = vrot.slane %v5318_v46, 1  ;;  %v940_v18 = vcombine.low %v3296_v59, %v685_v56 }
 0x1a3   : > { %v694_v19 = vcombine.high %v692_v4, %v692_v4  ;;  %v702_v35 = vcombine.high %v528_v12, %v528_v12  ;;  %v1024_v44 = vsel %vm1015_vm0, %v1021_v2, %v1023_v6  ;;  %v5339_v51 = vcombine.low %v5321_v60, %v5328_v11 }
 0x1a4   : > { %v5343_v52 = vcombine.low %v5324_v5, %v5332_v23  ;;  %v941_v57 = vcombine.low %v693_v10, %v692_v4  ;;  %3674 = vmatmul.mubr.f32.gmra.mrb[10].mxu0 %v1024_v44  ;;  %v1799_v62 = vsel %vm1015_vm0, %v1796_v28, %v1798_v14  ;;  %4304 = vmatpush3.bf16.msra.mxu1 %v5198_v15 }
 0x1a5   : > { %v5348_v59 = vrot.slane %v940_v18, %v5153_v30  ;;  %v1406_v63 = vcombine.low %v685_v56, %v693_v10  ;;  %3861 = vmatprep.mubr.f32.mxu1 %v1799_v62  ;;  %v1025_v2 = vrot.slane %v5339_v51, 1  ;;  %4180 = vmatpush3.bf16.msra.mxu0 %v5200_v16  ;;  %v1407_v40 = vcombine.low %v692_v4, %v694_v19  ;;  %v530_v10 = vld [vmem:[#allocation2 + $0x70] sm:$0xff] }
 0x1a6   : > { %5886 = vst [vmem:[#allocation24_spill] sm:$0xff] %v5343_v52  ;;  %v1800_v3 = vrot.slane %v5343_v52, 1  ;;  %v5353_v41 = vrot.slane %v941_v57, %v5153_v30  ;;  %v709_v15 = vrot.slane %v528_v12, %v5153_v30  ;;  %v957_v28 = vcombine.low %v694_v19, %v3297_v61  ;;  %4306 = vmatprep.subr.bf16.mxu1 %v5202_v17 }
 0x1a7   : > { %v5357_v44 = vrot.slane %v1406_v63, %v5153_v30  ;;  %v716_v56 = vrot.slane %v702_v35, %v5153_v30  ;;  %v1026_v18 = vsel %vm1015_vm0, %v1023_v6, %v1025_v2  ;;  %v5369_v16 = vrot.slane %v1407_v40, %v5153_v30  ;;  %4182 = vmatprep.subr.bf16.mxu0 %v5206_v24  ;;  %v3298_v35 = vld.sshfl [vmem:[#allocation2 + $0x68] sm:$0x3 pattern:$0x76325410] }
 0x1a8   : > { %5887 = vst [vmem:[#allocation25_spill] sm:$0xff] %v5353_v41  ;;  %v1801_v62 = vsel %vm1015_vm0, %v1798_v14, %v1800_v3  ;;  %v5366_v57 = vcombine.low %v5348_v59, %v5353_v41  ;;  %3676 = vmatprep.mubr.f32.mxu0 %v1026_v18  ;;  %v717_v4 = vcombine.high %v709_v15, %v709_v15 }
 0x1a9   : > { %3862 = vmatmul.mubr.f32.gmra.mrb[2].mxu1 %v1801_v62  ;;  %v5373_v12 = vrot.slane %v957_v28, %v5153_v30  ;;  %v1423_v19 = vcombine.low %v3297_v61, %v709_v15  ;;  %v5378_v14 = vcombine.low %v5357_v44, %v5369_v16  ;;  %4184 = vmatpush3.bf16.msra.mxu0 %v5206_v24 }
 0x1aa   : > { %5888 = vst [vmem:[#allocation26_spill] sm:$0xff] %v5366_v57  ;;  %v1027_v6 = vrot.slane %v5366_v57, 1  ;;  %4308 = vmatpush3.bf16.msra.mxu1 %v5202_v17  ;;  %v718_v40 = vcombine.high %v716_v56, %v716_v56  ;;  %v733_v63 = vrot.slane %v530_v10, %v5153_v30  ;;  %v958_v18 = vcombine.low %v709_v15, %v717_v4 }
 0x1ab   : > { %5889 = vst [vmem:[#allocation27_spill] sm:$0xff] %v5373_v12  ;;  %5890 = vst [vmem:[#allocation28_spill] sm:$0xff] %v5378_v14  ;;  %v1424_v62 = vcombine.low %v717_v4, %v716_v56  ;;  %v5384_v28 = vrot.slane %v1423_v19, %v5153_v30  ;;  %4310 = vmatprep.subr.bf16.mxu1 %v5208_v25  ;;  %v726_v61 = vcombine.high %v530_v10, %v530_v10  ;;  %v532_v19 = vld [vmem:[#allocation2 + $0x80] sm:$0xff] }
 0x1ac   : > { %v1028_v52 = vsel %vm1015_vm0, %v1025_v2, %v1027_v6  ;;  %v1802_v46 = vrot.slane %v5378_v14, 1  ;;  %v974_v9 = vcombine.low %v716_v56, %v718_v40  ;;  %v975_v27 = vcombine.low %v3298_v35, %v733_v63  ;;  %4186 = vmatprep.subr.bf16.mxu0 %v5210_v26 }
 0x1ad   : > { %3677 = vmatmul.mubr.f32.gmra.mrb[12].mxu0 %v1028_v52  ;;  %v5391_v17 = vrot.slane %v958_v18, %v5153_v30  ;;  %v5394_v24 = vrot.slane %v1424_v62, %v5153_v30  ;;  %v1440_v15 = vcombine.low %v718_v40, %v3298_v35  ;;  %v741_v4 = vcombine.high %v733_v63, %v733_v63  ;;  %v3299_v40 = vld.sshfl [vmem:[#allocation2 + $0x78] sm:$0x3 pattern:$0x76325410] }
 0x1ae   : > { %v1803_v10 = vsel %vm1015_vm0, %v1800_v3, %v1802_v46  ;;  %v5398_v2 = vrot.slane %v974_v9, %v5153_v30  ;;  %v5401_v56 = vrot.slane %v975_v27, %v5153_v30  ;;  %v740_v14 = vrot.slane %v726_v61, %v5153_v30  ;;  %4312 = vmatpush3.bf16.msra.mxu1 %v5208_v25 }
 0x1af   : > { %5891 = vst [vmem:[#allocation29_spill] sm:$0xff] %v5391_v17  ;;  %3864 = vmatprep.mubr.f32.mxu1 %v1803_v10  ;;  %v5407_v52 = vcombine.low %v5373_v12, %v5391_v17  ;;  %v5411_v35 = vcombine.low %v5384_v28, %v5394_v24  ;;  %v1441_v3 = vcombine.low %v733_v63, %v741_v4 }
 0x1b0   : > { %5892 = vst [vmem:[#allocation30_spill] sm:$0xff] %v5398_v2  ;;  %5893 = vst [vmem:[#allocation31_spill] sm:$0xff] %v5401_v56  ;;  %v5414_v9 = vrot.slane %v1440_v15, %v5153_v30  ;;  %v5418_v27 = vcombine.low %v5398_v2, %v5401_v56  ;;  %v742_v18 = vcombine.high %v740_v14, %v740_v14  ;;  %4188 = vmatpush3.bf16.msra.mxu0 %v5210_v26  ;;  %v820_v2 = vld [vmem:[#allocation8 + $0x78] sm:$0xff] }
 0x1b1   : > { %5894 = vst [vmem:[#allocation32_spill] sm:$0xff] %v5407_v52  ;;  %5895 = vst [vmem:[#allocation33_spill] sm:$0xff] %v5411_v35  ;;  %v5421_v25 = vrot.slane %v532_v19, %v5153_v30  ;;  %v991_v62 = vcombine.low %v741_v4, %v740_v14  ;;  %v1029_v61 = vrot.slane %v5407_v52, 1  ;;  %v1804_v10 = vrot.slane %v5411_v35, 1  ;;  %4314 = vmatprep.subr.bf16.mxu1 %v5212_v37 }
 0x1b2   : > { %5896 = vst [vmem:[#allocation34_spill] sm:$0xff] %v5418_v27  ;;  %v5427_v63 = vrot.slane %v1441_v3, %v5153_v30  ;;  %v750_v15 = vcombine.high %v532_v19, %v532_v19  ;;  %4190 = vmatprep.subr.bf16.mxu0 %v5214_v38  ;;  %v1031_v55 = vrot.slane %v5418_v27, 1  ;;  %v992_v56 = vcombine.low %v742_v18, %v3299_v40  ;;  %v819_v27 = vld [vmem:[#allocation8 + $0x70] sm:$0xff] }
 0x1b3   : > { %5897 = vst [vmem:[#allocation35_spill] sm:$0xff] %v5421_v25  ;;  %v5433_v17 = vrot.slane %v991_v62, %v5153_v30  ;;  %v1458_v26 = vcombine.low %v3299_v40, %v5421_v25  ;;  %4316 = vmatpush3.bf16.msra.mxu1 %v5212_v37  ;;  %v1030_v4 = vsel %vm1015_vm0, %v1027_v6, %v1029_v61 }
 0x1b4   : > { %v1805_v3 = vsel %vm1015_vm0, %v1802_v46, %v1804_v10  ;;  %v5441_v19 = vcombine.low %v5414_v9, %v5427_v63  ;;  %v1457_v35 = vcombine.low %v740_v14, %v742_v18  ;;  %4318 = vmatprep.subr.bf16.mxu1 %v5216_v39  ;;  %3679 = vmatprep.mubr.f32.mxu0 %v1030_v4  ;;  %v1964_v4 = vld [vmem:[#allocation8 + $0x2f0] sm:$0xff] }
 0x1b5   : > { %5898 = vst [vmem:[#allocation36_spill] sm:$0xff] %v5433_v17  ;;  %3865 = vmatmul.mubr.f32.gmra.mrb[4].mxu1 %v1805_v3  ;;  %v1032_v62 = vsel %vm1015_vm0, %v1029_v61, %v1031_v55  ;;  %v5446_v40 = vrot.slane %v992_v56, %v5153_v30  ;;  %v5449_v37 = vrot.slane %v1458_v26, %v5153_v30  ;;  %v1965_v61 = vld [vmem:[#allocation8 + $0x2f8] sm:$0xff] }
 0x1b6   : > { %5899 = vst [vmem:[#allocation37_spill] sm:$0xff] %v5441_v19  ;;  %3680 = vmatmul.mubr.f32.gmra.mrb[14].mxu0 %v1032_v62  ;;  %v1806_v46 = vrot.slane %v5441_v19, 1  ;;  %v5453_v6 = vrot.slane %v1457_v35, %v5153_v30  ;;  %v1014_v14 = vrot.slane %v5421_v25, %v5153_v30  ;;  %v5458_v18 = vrot.slane %v750_v15, %v5153_v30  ;;  %v5464_v26 = vld.sshfl [vmem:[#allocation2 + $0x88] sm:$0x3 pattern:$0x76325410] }
 0x1b7   : > { %5900 = vst [vmem:[#allocation38_spill] sm:$0xff] %v5446_v40  ;;  %v5462_v56 = vcombine.low %v5433_v17, %v5446_v40  ;;  %v5468_v3 = vcombine.high %v5421_v25, %v5421_v25  ;;  %4192 = vmatpush3.bf16.msra.mxu0 %v5214_v38  ;;  %4320 = vmatpush3.bf16.msra.mxu1 %v5216_v39  ;;  %v1288_v62 = vld [vmem:[#allocation8 + $0x100] sm:$0xff]  ;;  %v1289_v15 = vld [vmem:[#allocation8 + $0x108] sm:$0xff] }
 0x1b8   : > { %v4197_v35 = vpack.c.bf16 %v820_v2, %v819_v27  ;;  %v1807_v19 = vsel %vm1015_vm0, %v1804_v10, %v1806_v46  ;;  %v5475_v52 = vcombine.low %v5453_v6, %v5449_v37  ;;  %v1035_v40 = vrot.slane %v1014_v14, 1  ;;  %4194 = vmatprep.subr.bf16.mxu0 %v5220_v48  ;;  %4322 = vmatprep.subr.bf16.mxu1 %v5224_v53  ;;  %v2136_v27 = vld [vmem:[#allocation8 + $0x300] sm:$0xff]  ;;  %v2137_v10 = vld [vmem:[#allocation8 + $0x308] sm:$0xff] }
 0x1b9   : > { %5901 = vst [vmem:[#allocation39_spill] sm:$0xff] %v5462_v56  ;;  %v5479_v17 = vcombine.high %v5458_v18, %v5458_v18  ;;  %3867 = vmatprep.mubr.f32.mxu1 %v1807_v19  ;;  %v1033_v38 = vrot.slane %v5462_v56, 1  ;;  %v1626_v39 = vcombine.low %v5468_v3, %v5458_v18  ;;  %v1792_v2 = vrot.slane %v5157_v31, %v5153_v30 }
 0x1ba   : > { %5902 = vst [vmem:[#allocation40_spill] sm:$0xff] %v5475_v52  ;;  %v1808_v14 = vrot.slane %v5475_v52, 1  ;;  %v4325_v12 = vpack.c.bf16 %v1965_v61, %v1964_v4  ;;  %v4201_v25 = vpack.c.bf16 %v1289_v15, %v1288_v62  ;;  %v4329_v4 = vpack.c.bf16 %v2137_v10, %v2136_v27  ;;  %v2138_v61 = vld [vmem:[#allocation8 + $0x310] sm:$0xff]  ;;  %v2139_v62 = vld [vmem:[#allocation8 + $0x318] sm:$0xff] }
 0x1bb   : > { %v1627_v41 = vcombine.low %v5479_v17, %v5464_v26  ;;  %v1034_v57 = vsel %vm1015_vm0, %v1031_v55, %v1033_v38  ;;  %v1036_v19 = vsel %vm1015_vm0, %v1033_v38, %v1035_v40  ;;  %v5494_v56 = vrot.slane %v1626_v39, %v5153_v30  ;;  %4196 = vmatpush3.bf16.msra.mxu0 %v5220_v48  ;;  %v1290_v48 = vld [vmem:[#allocation8 + $0x110] sm:$0xff]  ;;  %v1295_v27 = vld [vmem:[#allocation8 + $0x138] sm:$0xff] }
 0x1bc   : > { %4324 = vmatpush3.bf16.msra.mxu1 %v5224_v53  ;;  %3682 = vmatprep.mubr.f32.mxu0 %v1034_v57  ;;  %v1809_v31 = vsel %vm1015_vm0, %v1806_v46, %v1808_v14  ;;  %v1812_v40 = vrot.slane %v1792_v2, 1  ;;  %v1291_v53 = vld [vmem:[#allocation8 + $0x118] sm:$0xff]  ;;  %v2492_v15 = vcombine.low %v5235_v8, %v5260_v49  ;;  %v4333_v38 = vpack.c.bf16 %v2139_v62, %v2138_v61  ;;  %v1294_v2 = vld [vmem:[#allocation8 + $0x130] sm:$0xff]  ;;  %v5906_v61 = vld [vmem:[#allocation25_spill] sm:$0xff] }
 0x1bd   : > { %v5500_v52 = vrot.slane %v1627_v41, %v5153_v30  ;;  %4198 = vmatprep.subr.bf16.mxu0 %v4197_v35  ;;  %3868 = vmatmul.mubr.f32.gmra.mrb[6].mxu1 %v1809_v31  ;;  %v4205_v41 = vpack.c.bf16 %v1291_v53, %v1290_v48  ;;  %v5522_v39 = vcombine.low %v5257_v47, %v5293_v21  ;;  %v2143_v53 = vld [vmem:[#allocation8 + $0x338] sm:$0xff] }
 0x1be   : > { %3683 = vmatmul.mubr.f32.gmra.mrb[16].mxu0 %v1036_v19  ;;  %4326 = vmatprep.subr.bf16.mxu1 %v4325_v12  ;;  %v2495_v47 = vcombine.low %v5332_v23, %v5357_v44  ;;  %v2498_v21 = vcombine.low %v5427_v63, %v5453_v6  ;;  %v1304_v10 = vcombine.low %v5164_v33, %v5160_v32  ;;  %v5903_v32 = vld [vmem:[#allocation26_spill] sm:$0xff]  ;;  %v5904_v33 = vld [vmem:[#allocation35_spill] sm:$0xff]  ;;  %v2864_v23 = vld [vmem:[#allocation9] sm:$0xff] }
 0x1bf   : > { %v5504_v55 = vcombine.low %v5494_v56, %v5500_v52  ;;  %3717 = vmatprep.mubr.f32.mxu0 %v5190_v50  ;;  %4200 = vmatpush3.bf16.msra.mxu0 %v4197_v35  ;;  %v1966_v50 = vcombine.low %v5239_v13, %v5252_v42  ;;  %v1293_v35 = vld [vmem:[#allocation8 + $0x128] sm:$0xff]  ;;  %v2140_v42 = vld [vmem:[#allocation8 + $0x320] sm:$0xff]  ;;  %v5548_v19 = vcombine.low %v5302_v45, %v5321_v60  ;;  %v2871_v6 = vld [vmem:[#allocation9 + $0x38] sm:$0xff] }
 0x1c0   : > { %4328 = vmatpush3.bf16.msra.mxu1 %v4325_v12  ;;  %4202 = vmatprep.subr.bf16.mxu0 %v4201_v25  ;;  %v1292_v12 = vld [vmem:[#allocation8 + $0x120] sm:$0xff]  ;;  %v4213_v48 = vpack.c.bf16 %v1295_v27, %v1294_v2  ;;  %v5911_v27 = vld [vmem:[#allocation34_spill] sm:$0xff] }
 0x1c1   : > { %v1810_v57 = vrot.slane %v5504_v55, 1  ;;  %4330 = vmatprep.subr.bf16.mxu1 %v4329_v4  ;;  %v4209_v13 = vpack.c.bf16 %v1293_v35, %v1292_v12  ;;  %v5908_v12 = vld [vmem:[#allocation17_spill] sm:$0xff]  ;;  %v2865_v44 = vld [vmem:[#allocation9 + $0x8] sm:$0xff] }
 0x1c2   : > { %3718 = vmatmul.mubr.f32.vlgmr.msra.gmra.mrb[8].mxu0 %v5249_v36  ;;  %v5518_v36 = vcombine.low %v5232_v7, %v5246_v29  ;;  %v2493_v7 = vcombine.low %v5281_v1, %v5307_v20  ;;  %v2494_v29 = vcombine.low %v5298_v43, %v5324_v5  ;;  %v1984_v35 = vcombine.low %v5464_v26, %v5908_v12  ;;  %v5912_v26 = vld [vmem:[#allocation36_spill] sm:$0xff]  ;;  %v1302_v12 = vld [vmem:[#allocation8 + $0x170] sm:$0xff]  ;;  %v5925_v1 = vld [vmem:[#allocation18_spill] sm:$0xff] }
 0x1c3   : > { %v1811_v31 = vsel %vm1015_vm0, %v1808_v14, %v1810_v57  ;;  %v1813_v46 = vsel %vm1015_vm0, %v1810_v57, %v1812_v40  ;;  %3720 = vmatprep.mubr.f32.mxu0 %v5265_v54  ;;  %4204 = vmatpush3.bf16.msra.mxu0 %v4201_v25  ;;  %v1305_v54 = vcombine.low %v5168_v34, %v5204_v22  ;;  %v2141_v25 = vld [vmem:[#allocation8 + $0x328] sm:$0xff]  ;;  %v1296_v57 = vld [vmem:[#allocation8 + $0x140] sm:$0xff]  ;;  %v5926_v20 = vld [vmem:[#allocation19_spill] sm:$0xff] }
 0x1c4   : > { %3870 = vmatprep.mubr.f32.mxu1 %v1811_v31  ;;  %4206 = vmatprep.subr.bf16.mxu0 %v4205_v41  ;;  %v2497_v22 = vcombine.low %v5394_v24, %v5414_v9  ;;  %v2499_v14 = vcombine.low %v5449_v37, %v5494_v56  ;;  %v4337_v40 = vpack.c.bf16 %v2141_v25, %v2140_v42  ;;  %v1299_v42 = vld [vmem:[#allocation8 + $0x158] sm:$0xff]  ;;  %v5910_v25 = vld [vmem:[#allocation29_spill] sm:$0xff]  ;;  %v2869_v63 = vld [vmem:[#allocation9 + $0x28] sm:$0xff] }
 0x1c5   : > { %3871 = vmatmul.mubr.f32.gmra.mrb[8].mxu1 %v1813_v46  ;;  %v1974_v31 = vcombine.low %v5904_v33, %v5468_v3  ;;  %v1319_v45 = vrot.slane %v1305_v54, %v5153_v30  ;;  %v2144_v46 = vld [vmem:[#allocation8 + $0x340] sm:$0xff]  ;;  %v5907_v3 = vld [vmem:[#allocation32_spill] sm:$0xff]  ;;  %v5909_v54 = vld [vmem:[#allocation30_spill] sm:$0xff]  ;;  %v1998_v33 = vrot.slane %v1984_v35, %v5153_v30  ;;  %v2508_v43 = vcombine.low %v5500_v52, %v5925_v1 }
 0x1c6   : > { %3905 = vmatprep.mubr.f32.mxu1 %v1966_v50  ;;  %3721 = vmatmul.mubr.f32.gmra.mrb[10].mxu0 %v5271_v58  ;;  %v2496_v58 = vcombine.low %v5369_v16, %v5384_v28  ;;  %v1983_v50 = vcombine.low %v5458_v18, %v5479_v17  ;;  %v5575_v2 = vcombine.low %v5910_v25, %v5909_v54  ;;  %v1303_v35 = vld [vmem:[#allocation8 + $0x178] sm:$0xff]  ;;  %v1611_v54 = vld [vmem:[#allocation8 + $0x188] sm:$0xff]  ;;  %v2150_v25 = vld [vmem:[#allocation8 + $0x370] sm:$0xff] }
 0x1c7   : > { %3723 = vmatprep.mubr.f32.mxu0 %v5311_v0  ;;  %4208 = vmatpush3.bf16.msra.mxu0 %v4205_v41  ;;  %v2142_v0 = vld [vmem:[#allocation8 + $0x330] sm:$0xff]  ;;  %v1297_v41 = vld [vmem:[#allocation8 + $0x148] sm:$0xff]  ;;  %v4425_v28 = vpack.c.bf16 %v2865_v44, %v2864_v23  ;;  %v2867_v24 = vld [vmem:[#allocation9 + $0x18] sm:$0xff] }
 0x1c8   : > { %4210 = vmatprep.subr.bf16.mxu0 %v4209_v13  ;;  %v4341_v60 = vpack.c.bf16 %v2143_v53, %v2142_v0  ;;  %v1981_v0 = vrot.slane %v1974_v31, %v5153_v30  ;;  %v5913_v53 = vld [vmem:[#allocation31_spill] sm:$0xff] }
 0x1c9   : > { %3906 = vmatmul.mubr.f32.vlgmr.msra.gmra.mrb[0].mxu1 %v5518_v36  ;;  %v2146_v31 = vld [vmem:[#allocation8 + $0x350] sm:$0xff] }
 0x1ca   : > { %3908 = vmatprep.mubr.f32.mxu1 %v5522_v39  ;;  %4332 = vmatpush3.bf16.msra.mxu1 %v4329_v4  ;;  %v5553_v4 = vcombine.low %v5328_v11, %v5348_v59  ;;  %v5562_v11 = vrot.slane %v1304_v10, %v5153_v30  ;;  %v5905_v59 = vld [vmem:[#allocation27_spill] sm:$0xff] }
 0x1cb   : > { %4334 = vmatprep.subr.bf16.mxu1 %v4333_v38  ;;  %3724 = vmatmul.mubr.f32.gmra.mrb[12].mxu0 %v5339_v51  ;;  %v4217_v51 = vpack.c.bf16 %v1297_v41, %v1296_v57  ;;  %v5566_v62 = vcombine.low %v5906_v61, %v5905_v59  ;;  %v5584_v57 = vcombine.low %v5913_v53, %v5912_v26  ;;  %v5914_v41 = vld [vmem:[#allocation39_spill] sm:$0xff]  ;;  %v1613_v53 = vld [vmem:[#allocation8 + $0x198] sm:$0xff] }
 0x1cc   : > { %3726 = vmatprep.mubr.f32.mxu0 %v5903_v32  ;;  %4212 = vmatpush3.bf16.msra.mxu0 %v4209_v13  ;;  %v1298_v13 = vld [vmem:[#allocation8 + $0x150] sm:$0xff]  ;;  %v1320_v10 = vcombine.low %v5562_v11, %v1319_v45  ;;  %v1991_v32 = vrot.slane %v1983_v50, %v5153_v30  ;;  %v5915_v45 = vld [vmem:[#allocation38_spill] sm:$0xff] }
 0x1cd   : > { %3909 = vmatmul.mubr.f32.gmra.mrb[2].mxu1 %v5548_v19  ;;  %4214 = vmatprep.subr.bf16.mxu0 %v4213_v48  ;;  %v4221_v18 = vpack.c.bf16 %v1299_v42, %v1298_v13  ;;  %v5590_v59 = vcombine.low %v5915_v45, %v1981_v0  ;;  %v2149_v13 = vld [vmem:[#allocation8 + $0x368] sm:$0xff]  ;;  %v1610_v42 = vld [vmem:[#allocation8 + $0x180] sm:$0xff]  ;;  %v1612_v26 = vld [vmem:[#allocation8 + $0x190] sm:$0xff] }
 0x1ce   : > { %3911 = vmatprep.mubr.f32.mxu1 %v5553_v4  ;;  %4336 = vmatpush3.bf16.msra.mxu1 %v4333_v38  ;;  %v2145_v38 = vld [vmem:[#allocation8 + $0x348] sm:$0xff]  ;;  %v5594_v61 = vcombine.low %v1991_v32, %v1998_v33  ;;  %v4233_v0 = vpack.c.bf16 %v1611_v54, %v1610_v42  ;;  %v5916_v33 = vld [vmem:[#allocation21_spill] sm:$0xff]  ;;  %v2299_v45 = vld [vmem:[#allocation8 + $0x398] sm:$0xff] }
 0x1cf   : > { %4338 = vmatprep.subr.bf16.mxu1 %v4337_v40  ;;  %3727 = vmatmul.mubr.f32.gmra.mrb[14].mxu0 %v5907_v3  ;;  %v4345_v17 = vpack.c.bf16 %v2145_v38, %v2144_v46  ;;  %v1301_v46 = vld [vmem:[#allocation8 + $0x168] sm:$0xff]  ;;  %v2148_v38 = vld [vmem:[#allocation8 + $0x360] sm:$0xff]  ;;  %v5920_v54 = vld [vmem:[#allocation24_spill] sm:$0xff] }
 0x1d0   : > { %3729 = vmatprep.mubr.f32.mxu0 %v5911_v27  ;;  %4216 = vmatpush3.bf16.msra.mxu0 %v4213_v48  ;;  %v2147_v48 = vld [vmem:[#allocation8 + $0x358] sm:$0xff]  ;;  %v2866_v16 = vld [vmem:[#allocation9 + $0x10] sm:$0xff] }
 0x1d1   : > { %3912 = vmatmul.mubr.f32.gmra.mrb[4].mxu1 %v5566_v62  ;;  %4218 = vmatprep.subr.bf16.mxu0 %v4217_v51  ;;  %v4349_v3 = vpack.c.bf16 %v2147_v48, %v2146_v31  ;;  %v2151_v27 = vld [vmem:[#allocation8 + $0x378] sm:$0xff]  ;;  %v2298_v31 = vld [vmem:[#allocation8 + $0x390] sm:$0xff]  ;;  %v4429_v9 = vpack.c.bf16 %v2867_v24, %v2866_v16 }
 0x1d2   : > { %3914 = vmatprep.mubr.f32.mxu1 %v5575_v2  ;;  %4340 = vmatpush3.bf16.msra.mxu1 %v4337_v40  ;;  %v1300_v40 = vld [vmem:[#allocation8 + $0x160] sm:$0xff]  ;;  %v5917_v48 = vld [vmem:[#allocation20_spill] sm:$0xff]  ;;  %v2870_v37 = vld [vmem:[#allocation9 + $0x30] sm:$0xff] }
 0x1d3   : > { %4342 = vmatprep.subr.bf16.mxu1 %v4341_v60  ;;  %3730 = vmatmul.mubr.f32.gmra.mrb[16].mxu0 %v5914_v41  ;;  %v4225_v50 = vpack.c.bf16 %v1301_v46, %v1300_v40  ;;  %v4237_v41 = vpack.c.bf16 %v1613_v53, %v1612_v26  ;;  %v1614_v40 = vld [vmem:[#allocation8 + $0x1a0] sm:$0xff]  ;;  %v1615_v46 = vld [vmem:[#allocation8 + $0x1a8] sm:$0xff]  ;;  %v5921_v26 = vld [vmem:[#allocation28_spill] sm:$0xff]  ;;  %v4437_v56 = vpack.c.bf16 %v2871_v6, %v2870_v37 }
 0x1d4   : > { %3764 = vmatprep.mubr.f32.mxu0 %v1320_v10  ;;  %4220 = vmatpush3.bf16.msra.mxu0 %v4217_v51  ;;  %v4229_v51 = vpack.c.bf16 %v1303_v35, %v1302_v12  ;;  %v4357_v10 = vpack.c.bf16 %v2151_v27, %v2150_v25  ;;  %v4241_v12 = vpack.c.bf16 %v1615_v46, %v1614_v40  ;;  %v2300_v35 = vld [vmem:[#allocation8 + $0x3a0] sm:$0xff]  ;;  %v2302_v27 = vld [vmem:[#allocation8 + $0x3b0] sm:$0xff]  ;;  %v2305_v40 = vld [vmem:[#allocation8 + $0x3c8] sm:$0xff] }
 0x1d5   : > { %3915 = vmatmul.mubr.f32.gmra.mrb[6].mxu1 %v5584_v57  ;;  %4222 = vmatprep.subr.bf16.mxu0 %v4221_v18  ;;  %v1618_v53 = vld [vmem:[#allocation8 + $0x1c0] sm:$0xff] }
 0x1d6   : > { %3917 = vmatprep.mubr.f32.mxu1 %v5590_v59  ;;  %4344 = vmatpush3.bf16.msra.mxu1 %v4341_v60  ;;  %v4353_v60 = vpack.c.bf16 %v2149_v13, %v2148_v38  ;;  %v2301_v38 = vld [vmem:[#allocation8 + $0x3a8] sm:$0xff]  ;;  %v5919_v13 = vld [vmem:[#allocation23_spill] sm:$0xff]  ;;  %v5923_v46 = vld [vmem:[#allocation37_spill] sm:$0xff] }
 0x1d7   : > { %4346 = vmatprep.subr.bf16.mxu1 %v4345_v17  ;;  %v4369_v42 = vpack.c.bf16 %v2301_v38, %v2300_v35  ;;  %v1620_v35 = vld [vmem:[#allocation8 + $0x1d0] sm:$0xff]  ;;  %v1621_v38 = vld [vmem:[#allocation8 + $0x1d8] sm:$0xff] }
 0x1d8   : > { %4224 = vmatpush3.bf16.msra.mxu0 %v4221_v18  ;;  %v2296_v18 = vld [vmem:[#allocation8 + $0x380] sm:$0xff] }
 0x1d9   : > { %3918 = vmatmul.mubr.f32.gmra.mrb[8].mxu1 %v5594_v61  ;;  %4226 = vmatprep.subr.bf16.mxu0 %v4225_v50 }
 0x1da   : > { %4348 = vmatpush3.bf16.msra.mxu1 %v4345_v17  ;;  %3952 = vmatprep.mubr.f32.mxu1 %v5518_v36  ;;  %v2297_v17 = vld [vmem:[#allocation8 + $0x388] sm:$0xff] }
 0x1db   : > { %4350 = vmatprep.subr.bf16.mxu1 %v4349_v3  ;;  %v4361_v32 = vpack.c.bf16 %v2297_v17, %v2296_v18  ;;  %v1619_v18 = vld [vmem:[#allocation8 + $0x1c8] sm:$0xff] }
 0x1dc   : > { %4228 = vmatpush3.bf16.msra.mxu0 %v4225_v50  ;;  %v5918_v50 = vld [vmem:[#allocation22_spill] sm:$0xff] }
 0x1dd   : > { %4230 = vmatprep.subr.bf16.mxu0 %v4229_v51 }
 0x1de   : > { %4352 = vmatpush3.bf16.msra.mxu1 %v4349_v3  ;;  %v4365_v3 = vpack.c.bf16 %v2299_v45, %v2298_v31  ;;  %v4249_v31 = vpack.c.bf16 %v1619_v18, %v1618_v53  ;;  %v2304_v45 = vld [vmem:[#allocation8 + $0x3c0] sm:$0xff]  ;;  %v1623_v18 = vld [vmem:[#allocation8 + $0x1e8] sm:$0xff] }
 0x1df   : > { %4354 = vmatprep.subr.bf16.mxu1 %v4353_v60  ;;  %v1622_v53 = vld [vmem:[#allocation8 + $0x1e0] sm:$0xff] }
 0x1e0   : > { %4232 = vmatpush3.bf16.msra.mxu0 %v4229_v51  ;;  %v1616_v51 = vld [vmem:[#allocation8 + $0x1b0] sm:$0xff] }
 0x1e1   : > { %4234 = vmatprep.subr.bf16.mxu0 %v4233_v0 }
 0x1e2   : > { %4356 = vmatpush3.bf16.msra.mxu1 %v4353_v60  ;;  %v1617_v60 = vld [vmem:[#allocation8 + $0x1b8] sm:$0xff] }
 0x1e3   : > { %4358 = vmatprep.subr.bf16.mxu1 %v4357_v10  ;;  %3765 = vmatmul.mubr.f32.vlgmr.msra.gmra.mrb[8].mxu0 %v5916_v33  ;;  %v4245_v25 = vpack.c.bf16 %v1617_v60, %v1616_v51  ;;  %v4253_v51 = vpack.c.bf16 %v1621_v38, %v1620_v35  ;;  %v2306_v60 = vld [vmem:[#allocation8 + $0x3d0] sm:$0xff]  ;;  %v2309_v35 = vld [vmem:[#allocation8 + $0x3e8] sm:$0xff]  ;;  %v1625_v38 = vld [vmem:[#allocation8 + $0x1f8] sm:$0xff] }
 0x1e4   : > { %3767 = vmatprep.mubr.f32.mxu0 %v5917_v48  ;;  %4236 = vmatpush3.bf16.msra.mxu0 %v4233_v0  ;;  %v2303_v0 = vld [vmem:[#allocation8 + $0x3b8] sm:$0xff] }
 0x1e5   : > { %4238 = vmatprep.subr.bf16.mxu0 %v4237_v41  ;;  %v4373_v17 = vpack.c.bf16 %v2303_v0, %v2302_v27  ;;  %v2307_v27 = vld [vmem:[#allocation8 + $0x3d8] sm:$0xff]  ;;  %v2320_v0 = vrot.slane %v5522_v39, 1 }
 0x1e6   : > { %4360 = vmatpush3.bf16.msra.mxu1 %v4357_v10  ;;  %v5605_v10 = vld.sshfl [vmem:[#allocation2 + $0x98] sm:$0x3 pattern:$0x76325410] }
 0x1e7   : > { %4362 = vmatprep.subr.bf16.mxu1 %v4361_v32  ;;  %3768 = vmatmul.mubr.f32.gmra.mrb[10].mxu0 %v5918_v50 }
 0x1e8   : > { %3770 = vmatprep.mubr.f32.mxu0 %v5919_v13  ;;  %4240 = vmatpush3.bf16.msra.mxu0 %v4237_v41  ;;  %v2153_v41 = vcombine.low %v5168_v34, %v5605_v10  ;;  %v4377_v34 = vpack.c.bf16 %v2305_v40, %v2304_v45  ;;  %v4257_v45 = vpack.c.bf16 %v1623_v18, %v1622_v53  ;;  %v2308_v40 = vld [vmem:[#allocation8 + $0x3e0] sm:$0xff]  ;;  %v2479_v18 = vld [vmem:[#allocation8 + $0x418] sm:$0xff] }
 0x1e9   : > { %3953 = vmatmul.mubr.f32.vlgmr.msra.gmra.mrb[0].mxu1 %v5522_v39  ;;  %4242 = vmatprep.subr.bf16.mxu0 %v4241_v12 }
 0x1ea   : > { %3955 = vmatprep.mubr.f32.mxu1 %v5548_v19  ;;  %4364 = vmatpush3.bf16.msra.mxu1 %v4361_v32  ;;  %v5922_v32 = vld [vmem:[#allocation33_spill] sm:$0xff] }
 0x1eb   : > { %4366 = vmatprep.subr.bf16.mxu1 %v4365_v3  ;;  %3771 = vmatmul.mubr.f32.gmra.mrb[12].mxu0 %v5920_v54 }
 0x1ec   : > { %3773 = vmatprep.mubr.f32.mxu0 %v5921_v26  ;;  %4244 = vmatpush3.bf16.msra.mxu0 %v4241_v12  ;;  %v5924_v12 = vld [vmem:[#allocation40_spill] sm:$0xff] }
 0x1ed   : > { %3956 = vmatmul.mubr.f32.gmra.mrb[2].mxu1 %v5553_v4  ;;  %4246 = vmatprep.subr.bf16.mxu0 %v4245_v25 }
 0x1ee   : > { %3958 = vmatprep.mubr.f32.mxu1 %v5566_v62  ;;  %4368 = vmatpush3.bf16.msra.mxu1 %v4365_v3  ;;  %v2167_v3 = vrot.slane %v2153_v41, %v5153_v30  ;;  %v4381_v41 = vpack.c.bf16 %v2307_v27, %v2306_v60  ;;  %v2476_v60 = vld [vmem:[#allocation8 + $0x400] sm:$0xff]  ;;  %v2477_v27 = vld [vmem:[#allocation8 + $0x408] sm:$0xff] }
 0x1ef   : > { %4370 = vmatprep.subr.bf16.mxu1 %v4369_v42  ;;  %3774 = vmatmul.mubr.f32.gmra.mrb[14].mxu0 %v5922_v32  ;;  %v4393_v53 = vpack.c.bf16 %v2477_v27, %v2476_v60  ;;  %v2486_v27 = vld [vmem:[#allocation8 + $0x450] sm:$0xff] }
 0x1f0   : > { %3776 = vmatprep.mubr.f32.mxu0 %v5923_v46  ;;  %4248 = vmatpush3.bf16.msra.mxu0 %v4245_v25  ;;  %v2319_v25 = vrot.slane %v5518_v36, 1  ;;  %v2311_v36 = vld [vmem:[#allocation8 + $0x3f8] sm:$0xff] }
 0x1f1   : > { %3959 = vmatmul.mubr.f32.gmra.mrb[4].mxu1 %v5575_v2  ;;  %4250 = vmatprep.subr.bf16.mxu0 %v4249_v31 }
 0x1f2   : > { %3961 = vmatprep.mubr.f32.mxu1 %v5584_v57  ;;  %4372 = vmatpush3.bf16.msra.mxu1 %v4369_v42  ;;  %v5623_v42 = vcombine.low %v5562_v11, %v2167_v3  ;;  %v2321_v39 = vsel %vm1015_vm0, %v2319_v25, %v2320_v0  ;;  %v4385_v11 = vpack.c.bf16 %v2309_v35, %v2308_v40  ;;  %v2324_v25 = vrot.slane %v5553_v4, 1  ;;  %v2480_v35 = vld [vmem:[#allocation8 + $0x420] sm:$0xff] }
 0x1f3   : > { %4374 = vmatprep.subr.bf16.mxu1 %v4373_v17  ;;  %3777 = vmatmul.mubr.f32.gmra.mrb[16].mxu0 %v5924_v12  ;;  %v2326_v40 = vrot.slane %v5566_v62, 1  ;;  %v2330_v62 = vrot.slane %v5584_v57, 1 }
 0x1f4   : > { %3811 = vmatprep.mubr.f32.mxu0 %v5916_v33  ;;  %4252 = vmatpush3.bf16.msra.mxu0 %v4249_v31  ;;  %v1624_v33 = vld [vmem:[#allocation8 + $0x1f0] sm:$0xff] }
 0x1f5   : > { %3962 = vmatmul.mubr.f32.gmra.mrb[6].mxu1 %v5590_v59  ;;  %4254 = vmatprep.subr.bf16.mxu0 %v4253_v51  ;;  %v2310_v31 = vld [vmem:[#allocation8 + $0x3f0] sm:$0xff] }
 0x1f6   : > { %3964 = vmatprep.mubr.f32.mxu1 %v5594_v61  ;;  %4376 = vmatpush3.bf16.msra.mxu1 %v4373_v17  ;;  %v4261_v17 = vpack.c.bf16 %v1625_v38, %v1624_v33  ;;  %v4389_v3 = vpack.c.bf16 %v2311_v36, %v2310_v31  ;;  %v2328_v33 = vrot.slane %v5575_v2, 1  ;;  %v2483_v38 = vld [vmem:[#allocation8 + $0x438] sm:$0xff]  ;;  %v2332_v2 = vrot.slane %v5590_v59, 1  ;;  %v2484_v31 = vld [vmem:[#allocation8 + $0x440] sm:$0xff]  ;;  %v2485_v36 = vld [vmem:[#allocation8 + $0x448] sm:$0xff] }
 0x1f7   : > { %4378 = vmatprep.subr.bf16.mxu1 %v4377_v34 }
 0x1f8   : > { %4256 = vmatpush3.bf16.msra.mxu0 %v4253_v51  ;;  %v2478_v51 = vld [vmem:[#allocation8 + $0x410] sm:$0xff]  ;;  %v2331_v57 = vsel %vm1015_vm0, %v2328_v33, %v2330_v62  ;;  %v2333_v59 = vsel %vm1015_vm0, %v2330_v62, %v2332_v2 }
 0x1f9   : > { %3965 = vmatmul.mubr.f32.gmra.mrb[8].mxu1 %v5623_v42  ;;  %4258 = vmatprep.subr.bf16.mxu0 %v4257_v45 }
 0x1fa   : > { %4380 = vmatpush3.bf16.msra.mxu1 %v4377_v34  ;;  %3999 = vmatprep.mubr.f32.mxu1 %v2321_v39  ;;  %v2322_v34 = vrot.slane %v5548_v19, 1  ;;  %v2481_v39 = vld [vmem:[#allocation8 + $0x428] sm:$0xff] }
 0x1fb   : > { %4382 = vmatprep.subr.bf16.mxu1 %v4381_v41  ;;  %v4401_v4 = vpack.c.bf16 %v2481_v39, %v2480_v35 }
 0x1fc   : > { %4260 = vmatpush3.bf16.msra.mxu0 %v4257_v45  ;;  %v2323_v45 = vsel %vm1015_vm0, %v2320_v0, %v2322_v34  ;;  %v2325_v19 = vsel %vm1015_vm0, %v2322_v34, %v2324_v25  ;;  %v2482_v0 = vld [vmem:[#allocation8 + $0x430] sm:$0xff] }
 0x1fd   : > { %4262 = vmatprep.subr.bf16.mxu0 %v4261_v17 }
 0x1fe   : > { %4384 = vmatpush3.bf16.msra.mxu1 %v4381_v41  ;;  %v4397_v41 = vpack.c.bf16 %v2479_v18, %v2478_v51  ;;  %v2489_v51 = vld [vmem:[#allocation8 + $0x468] sm:$0xff]  ;;  %v2490_v18 = vld [vmem:[#allocation8 + $0x470] sm:$0xff] }
 0x1ff   : > { %4386 = vmatprep.subr.bf16.mxu1 %v4385_v11 }
 0x200   : > { %4264 = vmatpush3.bf16.msra.mxu0 %v4261_v17  ;;  %v2334_v17 = vrot.slane %v5594_v61, 1  ;;  %v2487_v61 = vld [vmem:[#allocation8 + $0x458] sm:$0xff] }
 0x201   : > { %v4413_v34 = vpack.c.bf16 %v2487_v61, %v2486_v27  ;;  %4426 = vmatprep.subr.bf16.mxu0 %v4425_v28 }
 0x202   : > { %4388 = vmatpush3.bf16.msra.mxu1 %v4385_v11  ;;  %v2329_v11 = vsel %vm1015_vm0, %v2326_v40, %v2328_v33 }
 0x203   : > { %4390 = vmatprep.subr.bf16.mxu1 %v4389_v3  ;;  %3812 = vmatmul.mubr.f32.vlgmr.msra.gmra.mrb[8].mxu0 %v5917_v48  ;;  %v5637_v48 = vld.sshfl [vmem:[#allocation2 + $0xa0] sm:$0xff pattern:$0x76325410] }
 0x204   : > { %3814 = vmatprep.mubr.f32.mxu0 %v5918_v50  ;;  %v2327_v50 = vsel %vm1015_vm0, %v2324_v25, %v2326_v40  ;;  %v2491_v25 = vld [vmem:[#allocation8 + $0x478] sm:$0xff]  ;;  %v2510_v8 = vcombine.low %v5605_v10, %v5637_v48  ;;  %4428 = vmatpush3.bf16.msra.mxu0 %v4425_v28 }
 0x205   : > { %4430 = vmatprep.subr.bf16.mxu0 %v4429_v9  ;;  %v2879_v40 = vld [vmem:[#allocation9 + $0x78] sm:$0xff] }
 0x206   : > { %4392 = vmatpush3.bf16.msra.mxu1 %v4389_v3  ;;  %v2336_v3 = vrot.slane %v5623_v42, 1  ;;  %v2524_v49 = vrot.slane %v2510_v8, %v5153_v30 }
 0x207   : > { %4394 = vmatprep.subr.bf16.mxu1 %v4393_v53  ;;  %3815 = vmatmul.mubr.f32.gmra.mrb[10].mxu0 %v5919_v13  ;;  %v2318_v13 = vrot.slane %v5637_v48, %v5153_v30 }
 0x208   : > { %3817 = vmatprep.mubr.f32.mxu0 %v5920_v54  ;;  %v4405_v54 = vpack.c.bf16 %v2483_v38, %v2482_v0  ;;  %v2525_v5 = vcombine.low %v5926_v20, %v2524_v49  ;;  %4432 = vmatpush3.bf16.msra.mxu0 %v4429_v9 }
 0x209   : > { %4000 = vmatmul.mubr.f32.vlgmr.msra.gmra.mrb[0].mxu1 %v2323_v45  ;;  %v2338_v60 = vrot.slane %v2318_v13, 1  ;;  %v2878_v45 = vld [vmem:[#allocation9 + $0x70] sm:$0xff] }
 0x20a   : > { %4002 = vmatprep.mubr.f32.mxu1 %v2325_v19  ;;  %4396 = vmatpush3.bf16.msra.mxu1 %v4393_v53  ;;  %v2337_v53 = vsel %vm1015_vm0, %v2334_v17, %v2336_v3  ;;  %v4453_v35 = vpack.c.bf16 %v2879_v40, %v2878_v45  ;;  %v5693_v13 = vld [vmem:[%s5823_s4] ss:$0 sm:$0xff] }
 0x20b   : > { %4398 = vmatprep.subr.bf16.mxu1 %v4397_v41  ;;  %3818 = vmatmul.mubr.f32.gmra.mrb[12].mxu0 %v5921_v26  ;;  %v4409_v26 = vpack.c.bf16 %v2485_v36, %v2484_v31  ;;  %v2339_v42 = vsel %vm1015_vm0, %v2336_v3, %v2338_v60 }
 0x20c   : > { %3820 = vmatprep.mubr.f32.mxu0 %v5922_v32  ;;  %v2335_v32 = vsel %vm1015_vm0, %v2332_v2, %v2334_v17 }
 0x20d   : > { %4003 = vmatmul.mubr.f32.gmra.mrb[2].mxu1 %v2327_v50 }
 0x20e   : > { %4005 = vmatprep.mubr.f32.mxu1 %v2329_v11  ;;  %4400 = vmatpush3.bf16.msra.mxu1 %v4397_v41  ;;  %v4421_v41 = vpack.c.bf16 %v2491_v25, %v2490_v18 }
 0x20f   : > { %4402 = vmatprep.subr.bf16.mxu1 %v4401_v4  ;;  %3821 = vmatmul.mubr.f32.gmra.mrb[14].mxu0 %v5923_v46  ;;  %v2488_v46 = vld [vmem:[#allocation8 + $0x460] sm:$0xff] }
 0x210   : > { %3823 = vmatprep.mubr.f32.mxu0 %v5924_v12  ;;  %v4417_v12 = vpack.c.bf16 %v2489_v51, %v2488_v46 }
 0x211   : > { %4006 = vmatmul.mubr.f32.gmra.mrb[4].mxu1 %v2331_v57 }
 0x212   : > { %4008 = vmatprep.mubr.f32.mxu1 %v2333_v59  ;;  %4404 = vmatpush3.bf16.msra.mxu1 %v4401_v4 }
 0x213   : > { %4406 = vmatprep.subr.bf16.mxu1 %v4405_v54  ;;  %3824 = vmatmul.mubr.f32.gmra.mrb[16].mxu0 %v5504_v55  ;;  %v2868_v55 = vld [vmem:[#allocation9 + $0x20] sm:$0xff] }
 0x214   : > { %v4433_v52 = vpack.c.bf16 %v2869_v63, %v2868_v55 }
 0x215   : > { %4009 = vmatmul.mubr.f32.gmra.mrb[6].mxu1 %v2335_v32 }
 0x216   : > { %4011 = vmatprep.mubr.f32.mxu1 %v2337_v53  ;;  %4408 = vmatpush3.bf16.msra.mxu1 %v4405_v54 }
 0x217   : > { %4410 = vmatprep.subr.bf16.mxu1 %v4409_v26  ;;  %4434 = vmatprep.subr.bf16.mxu0 %v4433_v52 }
 0x218   : > { %4436 = vmatpush3.bf16.msra.mxu0 %v4433_v52 }
 0x219   : > { %4012 = vmatmul.mubr.f32.gmra.mrb[8].mxu1 %v2339_v42  ;;  %4438 = vmatprep.subr.bf16.mxu0 %v4437_v56 }
 0x21a   : > { %4412 = vmatpush3.bf16.msra.mxu1 %v4409_v26  ;;  %4046 = vmatprep.mubr.f32.mxu1 %v2492_v15  ;;  %v2872_v15 = vld [vmem:[#allocation9 + $0x40] sm:$0xff] }
 0x21b   : > { %4414 = vmatprep.subr.bf16.mxu1 %v4413_v34 }
 0x21c   : > { %4440 = vmatpush3.bf16.msra.mxu0 %v4437_v56 }
 0x21e   : > { %4416 = vmatpush3.bf16.msra.mxu1 %v4413_v34 }
 0x21f   : > { %4418 = vmatprep.subr.bf16.mxu1 %v4417_v12 }
 0x222   : > { %4420 = vmatpush3.bf16.msra.mxu1 %v4417_v12 }
 0x223   : > { %4422 = vmatprep.subr.bf16.mxu1 %v4421_v41 }
 0x226   : > { %4424 = vmatpush3.bf16.msra.mxu1 %v4421_v41 }
 0x227   : > { %4457 = vmatprep.subr.bf16.mxu1 %v4425_v28 }
 0x229   : > { %4047 = vmatmul.mubr.f32.vlgmr.msra.gmra.mrb[0].mxu1 %v2493_v7  ;;  %v2873_v7 = vld [vmem:[#allocation9 + $0x48] sm:$0xff] }
 0x22a   : > { %4049 = vmatprep.mubr.f32.mxu1 %v2494_v29  ;;  %4465 = vmatpush3.bf16.msra.mxu1 %v4425_v28  ;;  %v4441_v29 = vpack.c.bf16 %v2873_v7, %v2872_v15 }
 0x22b   : > { %4458 = vmatprep.subr.bf16.mxu1 %v4429_v9 }
 0x22c   : > { %4442 = vmatprep.subr.bf16.mxu0 %v4441_v29 }
 0x22d   : > { %4050 = vmatmul.mubr.f32.gmra.mrb[2].mxu1 %v2495_v47  ;;  %v2874_v47 = vld [vmem:[#allocation9 + $0x50] sm:$0xff]  ;;  %4444 = vmatpush3.bf16.msra.mxu0 %v4441_v29 }
 0x22e   : > { %4052 = vmatprep.mubr.f32.mxu1 %v2496_v58  ;;  %4466 = vmatpush3.bf16.msra.mxu1 %v4429_v9  ;;  %v2875_v58 = vld [vmem:[#allocation9 + $0x58] sm:$0xff] }
 0x22f   : > { %4459 = vmatprep.subr.bf16.mxu1 %v4433_v52 }
 0x231   : > { %4053 = vmatmul.mubr.f32.gmra.mrb[4].mxu1 %v2497_v22  ;;  %v4445_v22 = vpack.c.bf16 %v2875_v58, %v2874_v47 }
 0x232   : > { %4055 = vmatprep.mubr.f32.mxu1 %v2498_v21  ;;  %4467 = vmatpush3.bf16.msra.mxu1 %v4433_v52  ;;  %v2876_v21 = vld [vmem:[#allocation9 + $0x60] sm:$0xff] }
 0x233   : > { %4460 = vmatprep.subr.bf16.mxu1 %v4437_v56  ;;  %4446 = vmatprep.subr.bf16.mxu0 %v4445_v22 }
 0x234   : > { %4448 = vmatpush3.bf16.msra.mxu0 %v4445_v22 }
 0x235   : > { %4056 = vmatmul.mubr.f32.gmra.mrb[6].mxu1 %v2499_v14  ;;  %v2877_v14 = vld [vmem:[#allocation9 + $0x68] sm:$0xff] }
 0x236   : > { %4058 = vmatprep.mubr.f32.mxu1 %v2508_v43  ;;  %4468 = vmatpush3.bf16.msra.mxu1 %v4437_v56  ;;  %v4449_v10 = vpack.c.bf16 %v2877_v14, %v2876_v21 }
 0x237   : > { %4461 = vmatprep.subr.bf16.mxu1 %v4441_v29 }
 0x238   : > { %4450 = vmatprep.subr.bf16.mxu0 %v4449_v10 }
 0x239   : > { %4059 = vmatmul.mubr.f32.gmra.mrb[8].mxu1 %v2525_v5  ;;  %4452 = vmatpush3.bf16.msra.mxu0 %v4449_v10 }
 0x23a   : > { %4469 = vmatpush3.bf16.msra.mxu1 %v4441_v29  ;;  %4454 = vmatprep.subr.bf16.mxu0 %v4453_v35 }
 0x23b   : > { %4462 = vmatprep.subr.bf16.mxu1 %v4445_v22 }
 0x23d   : > { %4456 = vmatpush3.bf16.msra.mxu0 %v4453_v35 }
 0x23e   : > { %4470 = vmatpush3.bf16.msra.mxu1 %v4445_v22 }
 0x23f   : > { %4463 = vmatprep.subr.bf16.mxu1 %v4449_v10 }
 0x242   : > { %4471 = vmatpush3.bf16.msra.mxu1 %v4449_v10 }
 0x243   : > { %4464 = vmatprep.subr.bf16.mxu1 %v4453_v35 }
 0x246   : > { %4472 = vmatpush3.bf16.msra.mxu1 %v4453_v35 }
 0x2d6   : > { %v3813_v39 = vpop.f32.mrb[8].mxu0 }
 0x2d7   : > { %v1710_v19 = vpop.f32.mrb[9].mxu0 }
 0x2da   : > { %v3816_v33 = vpop.f32.mrb[10].mxu0 }
 0x2db   : > { %v1720_v4 = vpop.f32.mrb[11].mxu0 }
 0x2de   : > { %v3819_v48 = vpop.f32.mrb[12].mxu0 }
 0x2df   : > { %v1730_v50 = vpop.f32.mrb[13].mxu0 }
 0x2e2   : > { %v3822_v62 = vpop.f32.mrb[14].mxu0 }
 0x2e3   : > { %v1740_v0 = vpop.f32.mrb[15].mxu0 }
 0x2e6   : > { %v3825_v38 = vpop.f32.mrb[16].mxu0 }
 0x2e7   : > { %v5688_v11 = vpop.f32.mrb[17].mxu0 }
 0x2fc   : > { %v4048_v2 = vpop.f32.mrb[0].mxu1 }
 0x2fd   : > { %v4473_v54 = vadd.f32 %v4048_v2, %v3813_v39  ;;  %v2602_v57 = vpop.f32.mrb[1].mxu1 }
 0x2fe   : > { %v4474_v17 = vadd.f32 %v2602_v57, %v1710_v19 }
 0x2ff   : > { %v2669_v31 = vadd.f32 %v4473_v54, %v5693_v13 }
 0x300   : > { %v2668_v36 = vadd.f32 %v4474_v17, %v5693_v13  ;;  %v4051_v3 = vpop.f32.mrb[2].mxu1 }
 0x301   : > { %v2679_v59 = vmax.f32 %v2669_v31, 0.0  ;;  %v4475_v60 = vadd.f32 %v4051_v3, %v3816_v33  ;;  %v2612_v26 = vpop.f32.mrb[3].mxu1 }
 0x302   : > { %v2678_v32 = vmax.f32 %v2668_v36, 0.0  ;;  %v4476_v27 = vadd.f32 %v2612_v26, %v1720_v4 }
 0x303   : > { %v2715_v61 = vcombine.high %v2679_v59, %v2679_v59  ;;  %v2722_v53 = vrot.slane %v2679_v59, %v5153_v30  ;;  %v2671_v42 = vadd.f32 %v4475_v60, %v5693_v13 }
 0x304   : > { %v2698_v34 = vcombine.high %v2678_v32, %v2678_v32  ;;  %v2705_v46 = vrot.slane %v2678_v32, %v5153_v30  ;;  %v2670_v51 = vadd.f32 %v4476_v27, %v5693_v13  ;;  %v4054_v12 = vpop.f32.mrb[4].mxu1 }
 0x305   : > { %v2729_v18 = vrot.slane %v2715_v61, %v5153_v30  ;;  %v2730_v25 = vcombine.high %v2722_v53, %v2722_v53  ;;  %v2681_v41 = vmax.f32 %v2671_v42, 0.0  ;;  %v4477_v8 = vadd.f32 %v4054_v12, %v3819_v48  ;;  %v2622_v49 = vpop.f32.mrb[5].mxu1 }
 0x306   : > { %v2712_v1 = vrot.slane %v2698_v34, %v5153_v30  ;;  %v2713_v43 = vcombine.high %v2705_v46, %v2705_v46  ;;  %v2680_v20 = vmax.f32 %v2670_v51, 0.0  ;;  %v4478_v5 = vadd.f32 %v2622_v49, %v1730_v50 }
 0x307   : > { %v2904_v23 = vcombine.low %v2730_v25, %v2729_v18  ;;  %v2748_v44 = vcombine.high %v2681_v41, %v2681_v41  ;;  %v2755_v16 = vrot.slane %v2681_v41, %v5153_v30  ;;  %v2731_v28 = vcombine.high %v2729_v18, %v2729_v18 }
 0x308   : > { %v2714_v24 = vcombine.high %v2712_v1, %v2712_v1  ;;  %v5704_v9 = vcombine.low %v2705_v46, %v2713_v43  ;;  %v2732_v55 = vcombine.high %v2680_v20, %v2680_v20  ;;  %v2739_v63 = vrot.slane %v2680_v20, %v5153_v30  ;;  %v4057_v52 = vpop.f32.mrb[6].mxu1 }
 0x309   : > { %v2912_v37 = vrot.slane %v2904_v23, %v5153_v30  ;;  %v2762_v6 = vrot.slane %v2748_v44, %v5153_v30  ;;  %v2763_v56 = vcombine.high %v2755_v16, %v2755_v16  ;;  %v2673_v15 = vadd.f32 %v4477_v8, %v5693_v13  ;;  %v2632_v7 = vpop.f32.mrb[7].mxu1 }
 0x30a   : > { %v2746_v29 = vrot.slane %v2732_v55, %v5153_v30  ;;  %v2905_v47 = vcombine.low %v2731_v28, %v2739_v63  ;;  %v2672_v58 = vadd.f32 %v4478_v5, %v5693_v13  ;;  %v4479_v22 = vadd.f32 %v4057_v52, %v3822_v62 }
 0x30b   : > { %v2764_v21 = vcombine.high %v2762_v6, %v2762_v6  ;;  %v2922_v14 = vcombine.low %v2755_v16, %v2763_v56  ;;  %v2683_v10 = vmax.f32 %v2673_v15, 0.0  ;;  %v4480_v45 = vadd.f32 %v2632_v7, %v1740_v0 }
 0x30c   : > { %v2747_v40 = vcombine.high %v2746_v29, %v2746_v29  ;;  %v2919_v35 = vrot.slane %v2905_v47, %v5153_v30  ;;  %v2682_v39 = vmax.f32 %v2672_v58, 0.0  ;;  %v2675_v19 = vadd.f32 %v4479_v22, %v5693_v13  ;;  %v4060_v33 = vpop.f32.mrb[8].mxu1 }
 0x30d   : > { %v2781_v4 = vcombine.high %v2683_v10, %v2683_v10  ;;  %v2788_v48 = vrot.slane %v2683_v10, %v5153_v30  ;;  %v2674_v50 = vadd.f32 %v4480_v45, %v5693_v13  ;;  %v4481_v2 = vadd.f32 %v4060_v33, %v3825_v38  ;;  %v2642_v54 = vpop.f32.mrb[9].mxu1 }
 0x30e   : > { %v2920_v57 = vcombine.low %v2912_v37, %v2919_v35  ;;  %v2765_v62 = vcombine.high %v2682_v39, %v2682_v39  ;;  %v2772_v17 = vrot.slane %v2682_v39, %v5153_v30  ;;  %v2685_v31 = vmax.f32 %v2675_v19, 0.0 }
 0x30f   : > { %v2795_v0 = vrot.slane %v2781_v4, %v5153_v30  ;;  %v2796_v36 = vcombine.high %v2788_v48, %v2788_v48  ;;  %v2684_v3 = vmax.f32 %v2674_v50, 0.0  ;;  %v2677_v59 = vadd.f32 %v4481_v2, %v5693_v13 }
 0x310   : > { %v2779_v60 = vrot.slane %v2765_v62, %v5153_v30  ;;  %v2780_v26 = vcombine.high %v2772_v17, %v2772_v17  ;;  %v2938_v32 = vcombine.low %v2764_v21, %v2772_v17  ;;  %v2815_v27 = vcombine.high %v2685_v31, %v2685_v31 }
 0x311   : > { %v2797_v61 = vcombine.high %v2795_v0, %v2795_v0  ;;  %v2955_v53 = vcombine.low %v2788_v48, %v2796_v36  ;;  %v2822_v38 = vrot.slane %v2685_v31, %v5153_v30  ;;  %v2798_v42 = vcombine.high %v2684_v3, %v2684_v3  ;;  %v3304_v31 = vld [vmem:[%s5825_s6] ss:$0 sm:$0xff] }
 0x312   : > { %v2829_v34 = vrot.slane %v2815_v27, %v5153_v30  ;;  %v2805_v46 = vrot.slane %v2684_v3, %v5153_v30  ;;  %v2687_v51 = vmax.f32 %v2677_v59, 0.0  ;;  %v4482_v12 = vadd.f32 %v2642_v54, %v5688_v11 }
 0x313   : > { %v2812_v18 = vrot.slane %v2798_v42, %v5153_v30  ;;  %v2888_v25 = vcombine.low %v2712_v1, %v2714_v24  ;;  %v2895_v41 = vrot.slane %v5704_v9, %v5153_v30  ;;  %v2921_v8 = vcombine.low %v2746_v29, %v2747_v40 }
 0x314   : > { %v2830_v49 = vcombine.high %v2829_v34, %v2829_v34  ;;  %v2813_v43 = vcombine.high %v2805_v46, %v2805_v46  ;;  %v2848_v20 = vcombine.high %v2687_v51, %v2687_v51  ;;  %v2855_v5 = vrot.slane %v2687_v51, %v5153_v30 }
 0x315   : > { %v2814_v23 = vcombine.high %v2812_v18, %v2812_v18  ;;  %v2676_v44 = vadd.f32 %v4482_v12, %v5693_v13  ;;  %v2902_v16 = vrot.slane %v2888_v25, %v5153_v30  ;;  %v2929_v28 = vrot.slane %v2921_v8, %v5153_v30  ;;  %v4647_v8 = vld [vmem:[%s5104_s8 + $0x10] sm:$0xff] }
 0x316   : > { %v2972_v11 = vcombine.low %v2813_v43, %v2812_v18  ;;  %v2862_v55 = vrot.slane %v2848_v20, %v5153_v30  ;;  %v2863_v1 = vcombine.high %v2855_v5, %v2855_v5  ;;  %v2936_v24 = vrot.slane %v2922_v14, %v5153_v30  ;;  %v4646_v18 = vld [vmem:[%s5104_s8 + $0x18] sm:$0xff]  ;;  %v4648_v43 = vld [vmem:[%s5104_s8 + $0x28] sm:$0xff] }
 0x317   : > { %v2973_v9 = vcombine.low %v2814_v23, %v2822_v38  ;;  %v2686_v63 = vmax.f32 %v2676_v44, 0.0  ;;  %v2903_v52 = vcombine.low %v2895_v41, %v2902_v16  ;;  %v2939_v37 = vcombine.low %v2780_v26, %v2779_v60  ;;  %v4644_v60 = vld [vmem:[%s5104_s8 + $0x8] sm:$0xff]  ;;  %v4649_v23 = vld [vmem:[%s5104_s8 + $0x20] sm:$0xff] }
 0x318   : > { %v2980_v6 = vrot.slane %v2972_v11, %v5153_v30  ;;  %v2937_v56 = vcombine.low %v2929_v28, %v2936_v24  ;;  %v2946_v15 = vrot.slane %v2938_v32, %v5153_v30  ;;  %v2956_v13 = vcombine.low %v2795_v0, %v2797_v61  ;;  %v4645_v32 = vld [vmem:[%s5104_s8] sm:$0xff] }
 0x319   : > { %v2987_v7 = vrot.slane %v2973_v9, %v5153_v30  ;;  %v2831_v29 = vcombine.high %v2686_v63, %v2686_v63  ;;  %v2838_v47 = vrot.slane %v2686_v63, %v5153_v30  ;;  %4093 = vmatprep.mubr.f32.mxu0 %v2903_v52  ;;  %v2953_v58 = vrot.slane %v2939_v37, %v5153_v30  ;;  %v4650_v63 = vld [vmem:[%s5104_s8 + $0x38] sm:$0xff]  ;;  %v4651_v37 = vld [vmem:[%s5104_s8 + $0x30] sm:$0xff]  ;;  %s4772_s8 = scalar_lea.vmem %s4771_s9, 2048 }
 0x31a   : > { %4094 = vmatmul.mubr.f32.vlgmr.msra.gmra.mrb[18].mxu0 %v2920_v57  ;;  %v2963_v22 = vrot.slane %v2955_v53, %v5153_v30  ;;  %v2970_v21 = vrot.slane %v2956_v13, %v5153_v30  ;;  %v2989_v14 = vcombine.low %v2829_v34, %v2830_v49  ;;  %v3007_v4 = vcombine.low %v2863_v1, %v2862_v55  ;;  %p4774_p1 = scmp.lt.s32.totalorder %s4772_s8, %s4766_s28 }
 0x31b   : > { %v2988_v10 = vcombine.low %v2980_v6, %v2987_v7  ;;  %v2845_v45 = vrot.slane %v2831_v29, %v5153_v30  ;;  %v2846_v40 = vcombine.high %v2838_v47, %v2838_v47  ;;  %4096 = vmatprep.mubr.f32.mxu0 %v2937_v56  ;;  %v2954_v35 = vcombine.low %v2946_v15, %v2953_v58 }
 0x31c   : > { %v2971_v39 = vcombine.low %v2963_v22, %v2970_v21  ;;  %v2997_v48 = vrot.slane %v2989_v14, %v5153_v30  ;;  %v3021_v62 = vrot.slane %v3007_v4, %v5153_v30  ;;  %p4775_p2 = por %p4774_p1, %p4773_p12 }
 0x31d   : > { %v2847_v19 = vcombine.high %v2845_v45, %v2845_v45  ;;  %v2990_v33 = vcombine.low %v2838_v47, %v2846_v40 }
 0x31e   : > { %4097 = vmatmul.mubr.f32.gmra.mrb[20].mxu0 %v2954_v35  ;;  %4099 = vmatprep.mubr.f32.mxu1 %v2971_v39  ;;  %p4776_p4 = pnand %p4775_p2, %p4769_p7 }
 0x31f   : > { %4100 = vmatmul.mubr.f32.vlgmr.msra.gmra.mrb[10].mxu1 %v2988_v10  ;;  %v3004_v50 = vrot.slane %v2990_v33, %v5153_v30  ;;  %v3006_v2 = vcombine.low %v2847_v19, %v2855_v5 }
 0x321   : > { %v3005_v54 = vcombine.low %v2997_v48, %v3004_v50  ;;  %v3014_v57 = vrot.slane %v3006_v2, %v5153_v30 }
 0x323   : > { %4102 = vmatprep.mubr.f32.mxu1 %v3005_v54  ;;  %v3022_v17 = vcombine.low %v3014_v57, %v3021_v62 }
 0x325   : > { %4103 = vmatmul.mubr.f32.gmra.mrb[12].mxu1 %v3022_v17 }
 0x3ed   : > { %v4095_v0 = vpop.f32.mrb[18].mxu0 }
 0x3ee   : > { %v3103_v36 = vadd.f32 %v4095_v0, %v3304_v31  ;;  %v3097_v3 = vpop.f32.mrb[19].mxu0 }
 0x3ef   : > { %v3098_v59 = vadd.f32 %v3304_v31, %v3097_v3 }
 0x3f0   : > { %v3137_v26 = vadd.f32 %v4644_v60, %v3103_v36 }
 0x3f1   : > { %v3136_v27 = vadd.f32 %v4645_v32, %v3098_v59  ;;  %v4098_v61 = vpop.f32.mrb[20].mxu0 }
 0x3f2   : > { %v3145_v30 = vmax.f32 %v3137_v26, 0.0  ;;  %v3113_v53 = vadd.f32 %v4098_v61, %v3304_v31  ;;  %v3107_v38 = vpop.f32.mrb[21].mxu0  ;;  %v4101_v42 = vpop.f32.mrb[10].mxu1 }
 0x3f3   : > { %v3144_v34 = vmax.f32 %v3136_v27, 0.0  ;;  %v3108_v46 = vadd.f32 %v3304_v31, %v3107_v38  ;;  %v3123_v51 = vadd.f32 %v4101_v42, %v3304_v31  ;;  %v3117_v12 = vpop.f32.mrb[11].mxu1 }
 0x3f4   : > { %3153 = vst [vmem:[%s5752_s12 + $0x8] sm:$0xff] %v3145_v30  ;;  %v3139_v25 = vadd.f32 %v4646_v18, %v3113_v53  ;;  %v3118_v41 = vadd.f32 %v3304_v31, %v3117_v12 }
 0x3f5   : > { %3152 = vst [vmem:[%s5752_s12] sm:$0xff] %v3144_v34  ;;  %v3138_v49 = vadd.f32 %v4647_v8, %v3108_v46  ;;  %v3141_v20 = vadd.f32 %v4648_v43, %v3123_v51 }
 0x3f6   : > { %v3147_v5 = vmax.f32 %v3139_v25, 0.0  ;;  %v3140_v44 = vadd.f32 %v4649_v23, %v3118_v41 }
 0x3f7   : > { %v3146_v16 = vmax.f32 %v3138_v49, 0.0  ;;  %v3149_v28 = vmax.f32 %v3141_v20, 0.0 }
 0x3f8   : > { %3155 = vst [vmem:[%s5752_s12 + $0x18] sm:$0xff] %v3147_v5  ;;  %v3148_v11 = vmax.f32 %v3140_v44, 0.0  ;;  %v4104_v55 = vpop.f32.mrb[12].mxu1 }
 0x3f9   : > { %3154 = vst [vmem:[%s5752_s12 + $0x10] sm:$0xff] %v3146_v16  ;;  %3157 = vst [vmem:[%s5752_s12 + $0x28] sm:$0xff] %v3149_v28  ;;  %v3133_v1 = vadd.f32 %v4104_v55, %v3304_v31  ;;  %v3127_v24 = vpop.f32.mrb[13].mxu1 }
 0x3fa   : > { %3156 = vst [vmem:[%s5752_s12 + $0x20] sm:$0xff] %v3148_v11  ;;  %v3128_v9 = vadd.f32 %v3304_v31, %v3127_v24 }
 0x3fb   : > { %v3143_v52 = vadd.f32 %v4650_v63, %v3133_v1 }
 0x3fc   : > { %v3142_v6 = vadd.f32 %v4651_v37, %v3128_v9 }
 0x3fd   : > { %v3151_v56 = vmax.f32 %v3143_v52, 0.0 }
 0x3fe   : > { %v3150_v15 = vmax.f32 %v3142_v6, 0.0 }
 0x3ff   : > { %3159 = vst [vmem:[%s5752_s12 + $0x38] sm:$0xff] %v3151_v56 }
 0x400   : > { %3158 = vst [vmem:[%s5752_s12 + $0x30] sm:$0xff] %v3150_v15 }
 0x401   : > { %4779 = shalt.err (!%p4776_p4)
}
 0x402   : > { %s4780_s13 = scalar_lea.hbm %s5773_s23, 1024  ;;  %s4784_s14 = scalar_lea.hbm %s5826_s7, 2048 }
 0x403   : > { %p4781_p9 = scmp.ne.s32.totalorder %s5773_s23, %s4780_s13  ;;  %p4785_p8 = scmp.lt.u32.totalorder %s5773_s23, %s5826_s7 }
 0x404   : > { %p4786_p13 = scmp.lt.u32.totalorder %s4784_s14, %s4780_s13  ;;  %p4788_p10 = scmp.lt.u32.totalorder %s4780_s13, %s5773_s23 }
 0x405   : > { %p4782_p0 = pnand %p4781_p9, %p5047_p5 }
 0x406   : > { %p4787_p6 = por %p4786_p13, %p4785_p8 }
 0x407   : > { %p4783_p11 = pneg %p4782_p0 }
 0x408   : > { %p4789_p3 = por %p4788_p10, %p4787_p6 }
 0x40a   : > { %p4790_p7 = pnand %p4789_p3, %p4783_p11 }
 0x40c   : > { %4793 = shalt.err (!%p4790_p7)
}
 0x40d   : > { %s4851_s16 = smov 128   ;;  %s4852_s29 = smov 8  }
 0x40e   : > { %4567 = dma.vmem_to_hbm [thread:$0]  (%p5047_p5), %s5767_s20, 1024, %s5773_s23, %s3161_s11, %s4851_s16, %s4851_s16, %s4852_s29  }
 0x40f PF: > { %s5927_s28 = sld [smem:[#allocation16_spill]]  ;;  %s3189_s30 = sand.u32 1, %s4828_s24  }
 0x410   : > { %p5929_p1 = scmp.ge.s32.totalorder %s4840_s27, 2  ;;  %s3190_s9 = scalar_lea.sflag [#allocation5], %s3189_s30 }
 0x415   : > { %p5928_p12 = scmp.ne.s32.totalorder %s5927_s28, 0 }
 0x417   : > { %p4584_p2 = pnand %p5929_p1, %p5928_p12 }
 0x419   : > { %4823 = dma.done.wait (!%p4584_p2), %s3190_s9, 1024  }
 0x41a   : > { %4825 = vsyncadd (!%p4584_p2), %s3190_s9, 4294966272  ;;  %p22_p4 = scmp.ge.s32.totalorder %s5033_s22, 4   ;;  %s5930_s24 = smov %s4832_s25 }
 0x41b   : > { %s5931_s25 = smov %s4836_s26  ;;  %s5932_s26 = smov %s5043_s18 }
 0x41c   : > { %s5933_s27 = smov %s5033_s22  ;;  %24 = sbr.rel (!%p22_p4) target bundleno = 7 (0x7), region = 114 }
 0x423   :  { %3195 = vsyncpa [#allocation4], 1 }
 0x424   :  { %3197 = vsyncpa [#allocation4 + $0x1], 1 }
 0x425   :  { %3198 = vsyncpa [#allocation7], 1 }
 0x426   :  { %3199 = vsyncpa [#allocation10], 1 }
 0x427   :  { %3200 = vsyncpa [#allocation5], 1 }
 0x428   :  { %3202 = vsyncpa [#allocation5 + $0x1], 1 }

</bundles_post_ra>
